<compile_context>
chip_gen: v7x
topology: tpu7x:2x2x1
jax: 0.10.0
libtpu: 0.0.40
codegen_flags: <defaults>
</compile_context>

<pallas_src>
import jax
import jax.numpy as jnp
from jax.experimental import pallas as pl
from jax.experimental.pallas import tpu as pltpu


def receiver_kernel(y_ref, v_ref, sel_ref, o_ref):
    # y_ref:   [TB, N*C]       flattened candidates (input dtype), batch on sublanes
    # v_ref:   [TB, C]   f32   fused per-sample params: col 0 = bias.x, col c = (W@x)_{c-1}
    # sel_ref: [C-1, N*C, N]   one-hot channel-selection matrices (constant, fetched once)
    # o_ref:   [TB, N]   f32   energies block
    y = y_ref[...]                      # dense [TB, N*C]
    v = v_ref[...]                      # [TB, C]
    n_coord = sel_ref.shape[0]          # C - 1

    e = v[:, 0:1]                       # bias . x[b], broadcasts along lanes
    for c in range(1, n_coord + 1):
        # ch[b, n] = _input[b, n, c]: strided channel extraction done as a one-hot
        # matmul on the MXU (keeps the streaming path pure VPU/DMA, zero XLU work).
        # Exact: each output element is 1.0 * y + zeros, accumulated in f32.
        ch = jnp.dot(y, sel_ref[c - 1],
                     preferred_element_type=jnp.float32,
                     precision=jax.lax.Precision.HIGHEST)      # [TB, N]
        e = e + ch * v[:, c:c + 1]                              # lane-broadcast FMA
    o_ref[...] = e


def receiver_forward(x, _input, weight, bias, *, min_kernel_bytes=32 * 1024):
    """Receiver forward (num_layers=1, ids=3).

    x:      [B, H]      message from the Sender
    _input: [B, N, C]   candidate colors (channel 0 = color id, channels 1: = coords)
    weight: [C-1, H]    Linear(ids, hidden) weight, stored input-major (in x out)
    bias:   [H]         Linear bias
    returns energies with PyTorch .squeeze() semantics ([B, N] when B, N > 1).
    """
    B, H = x.shape
    _, N, C = _input.shape
    assert weight.shape == (C - 1, H)

    x = x.astype(jnp.float32)
    weight = weight.astype(jnp.float32)
    bias = bias.astype(jnp.float32)
    # Keep bf16 candidates bf16 through the DMA (halves HBM traffic on v6e/v7x);
    # anything that is neither f32 nor bf16 is promoted.  No wrapper cast pass
    # is issued for the common f32 case.
    if _input.dtype != jnp.float32 and _input.dtype != jnp.bfloat16:
        _input = _input.astype(jnp.float32)
    itemsize = _input.dtype.itemsize

    # Tiny prologue (plain JAX, O(B*H)): fold Linear + final dot into per-sample
    # coefficients.  col 0 = bias . x[b];  col c = (W @ x[b])_{c-1}.
    s = x @ bias                                      # [B]
    wx = x @ weight.T                                 # [B, C-1]
    v = jnp.concatenate([s[:, None], wx], axis=1)     # [B, C] f32

    # Tiny-problem fast path: pallas_call launch + DMA setup would dominate.
    total_bytes = B * N * C * itemsize
    if B < 8 or total_bytes < min_kernel_bytes:
        e = jnp.einsum('bnc,bc->bn',
                       _input[:, :, 1:].astype(jnp.float32), wx) + s[:, None]
        return jnp.squeeze(e)

    NC = N * C
    y2d = _input.reshape(B, NC)                       # free reshape (contiguous)

    # One-hot channel selection: sel[c-1, j, n] = 1  iff  j == n*C + c.
    # Built in the candidates' dtype so the MXU runs bf16 when the input is bf16.
    j = jnp.arange(NC, dtype=jnp.int32)
    n = jnp.arange(N, dtype=jnp.int32)
    c_idx = jnp.arange(1, C, dtype=jnp.int32)
    sel = (j[None, :, None] == (n[None, None, :] * C + c_idx[:, None, None]))
    sel = sel.astype(_input.dtype)                    # [C-1, NC, N]

    # Batch tile, sized by bytes (~2 MiB of candidate data per grid step), a
    # multiple of 8 (sublanes), capped at 4096 rows (bounds the lane-padded
    # [TB, C] -> [TB, 128] coefficient buffer to 2 MiB per buffer), and small
    # enough to give >= 2 grid steps when B allows (both v7x TensorCores).
    tb = (2 * 1024 * 1024) // (NC * itemsize)
    tb = max(8, min((tb // 8) * 8, 4096))
    half_b = -(-B // 2)                               # ceil(B / 2)
    half_b = -(-half_b // 8) * 8                      # ... rounded up to 8
    tb = min(tb, max(8, half_b))
    tb = min(tb, -(-B // 8) * 8)                      # never exceed round_up(B, 8)
    grid = (pl.cdiv(B, tb),)

    # Per-step VMEM (double-buffered):
    #   candidates: 2 * tb * NC * itemsize            (~4 MiB worst case)
    #   coeffs:     2 * tb * 128 * 4                  (lane-padded, <= 4 MiB at tb=4096)
    #   output:     2 * tb * N * 4
    #   sel:        (C-1) * NC * N * itemsize         (constant index_map -> one DMA)
    # Comfortably under the 32 MiB scoped default on v5e / v6e / v7x.
    out = pl.pallas_call(
        receiver_kernel,
        out_shape=jax.ShapeDtypeStruct((B, N), jnp.float32),
        grid_spec=pltpu.PrefetchScalarGridSpec(
            num_scalar_prefetch=0,
            grid=grid,
            in_specs=[
                pl.BlockSpec((tb, NC), lambda i: (i, 0)),           # candidates (dense)
                pl.BlockSpec((tb, C), lambda i: (i, 0)),            # fused coefficients
                pl.BlockSpec((C - 1, NC, N), lambda i: (0, 0, 0)),  # one-hot constants
            ],
            out_specs=pl.BlockSpec((tb, N), lambda i: (i, 0)),      # energies [B, N]
        ),
        compiler_params=pltpu.CompilerParams(
            dimension_semantics=("parallel",)),
        cost_estimate=pl.CostEstimate(
            flops=2 * B * NC * (C - 1) * N + 2 * B * N * (C - 1),
            transcendentals=0,
            bytes_accessed=B * NC * itemsize + 4 * (B * C + B * N)
                           + (C - 1) * NC * N * itemsize),
    )(y2d, v, sel)

    # Match PyTorch's .squeeze(): drop any size-1 dims (e.g. B == 1 or N == 1).
    return jnp.squeeze(out)


if __name__ == "__main__":
    # Big enough to take the Pallas path with 2 grid steps, but still small.
    B, N, H, C = 256, 16, 32, 4

    key = jax.random.PRNGKey(0)
    k1, k2, k3, k4 = jax.random.split(key, 4)

    # nn.Linear(3, hidden) parameters, stored input-major ([3, H]).
    weight = jax.random.normal(k1, (C - 1, H), dtype=jnp.float32) * 0.1
    bias = jax.random.normal(k2, (H,), dtype=jnp.float32) * 0.1

    x = jax.random.normal(k3, (B, H), dtype=jnp.float32)           # Sender message
    _input = jax.random.normal(k4, (B, N, C), dtype=jnp.float32)   # candidates (ch 0 = id)

    def reference(x_, inp_, w_, b_):
        emb = inp_[:, :, 1:] @ w_ + b_                 # [B, N, H] (unfused order)
        return jnp.squeeze(emb @ x_[:, :, None], axis=-1)

    # Pallas kernel path.
    energies = jax.block_until_ready(receiver_forward(x, _input, weight, bias))
    ref = reference(x, _input, weight, bias)
    assert energies.shape == (B, N), energies.shape
    assert jnp.allclose(energies, ref, atol=1e-5, rtol=1e-5)

    # Tiny-problem fast path (default game-sized shapes, no pallas_call).
    Bs, Ns = 8, 8
    e_small = jax.block_until_ready(
        receiver_forward(x[:Bs], _input[:Bs, :Ns], weight, bias))
    ref_small = reference(x[:Bs], _input[:Bs, :Ns], weight, bias)
    assert e_small.shape == (Bs, Ns), e_small.shape
    assert jnp.allclose(e_small, ref_small, atol=1e-5, rtol=1e-5)

    print("KERNEL_OK")
</pallas_src>

<mosaic_0001>
module attributes {stable_mosaic.version = 11 : i64} {
  func.func @receiver_kernel(%arg0: i32, %arg1: memref<128x64xf32, #tpu.memory_space<vmem>>, %arg2: memref<128x4xf32, #tpu.memory_space<vmem>>, %arg3: memref<3x64x16xf32, #tpu.memory_space<vmem>>, %arg4: memref<128x16xf32, #tpu.memory_space<vmem>>) attributes {dimension_semantics = [#tpu.dimension_semantics<parallel>], iteration_bounds = array<i64: 2>, scalar_prefetch = 0 : i64, scratch_operands = 0 : i64, tpu.core_type = #tpu.core_type<tc>, window_params = [{transform_indices = @transform_0, window_bounds = array<i64: 128, 64>}, {transform_indices = @transform_1, window_bounds = array<i64: 128, 4>}, {pipeline_mode = #tpu.pipeline_mode<synchronous>, transform_indices = @transform_2, window_bounds = array<i64: 3, 64, 16>}, {transform_indices = @transform_3, window_bounds = array<i64: 128, 16>}]} {
    %c0 = arith.constant 0 : index
    %c0_0 = arith.constant 0 : index
    %0 = vector.load %arg1[%c0, %c0_0] : memref<128x64xf32, #tpu.memory_space<vmem>>, vector<128x64xf32>
    %c0_1 = arith.constant 0 : index
    %c0_2 = arith.constant 0 : index
    %1 = vector.load %arg2[%c0_1, %c0_2] : memref<128x4xf32, #tpu.memory_space<vmem>>, vector<128x4xf32>
    %2 = vector.extract_strided_slice %1 {offsets = [0, 0], sizes = [128, 1], strides = [1, 1]} : vector<128x4xf32> to vector<128x1xf32>
    %c0_3 = arith.constant 0 : index
    %c0_4 = arith.constant 0 : index
    %c0_5 = arith.constant 0 : index
    %3 = vector.load %arg3[%c0_3, %c0_4, %c0_5] : memref<3x64x16xf32, #tpu.memory_space<vmem>>, vector<1x64x16xf32>
    %4 = vector.shape_cast %3 : vector<1x64x16xf32> to vector<64x16xf32>
    %cst = arith.constant dense<0.000000e+00> : vector<128x16xf32>
    %5 = tpu.matmul %0, %4, %cst {dimension_numbers = #tpu.dot_dimension_numbers<[1], [0], [0], [1], [0, 0, 1, 1], [], []>, precision = #tpu.contract_precision<fp32>} : vector<128x64xf32>, vector<64x16xf32>, vector<128x16xf32> -> vector<128x16xf32>
    %6 = vector.extract_strided_slice %1 {offsets = [0, 1], sizes = [128, 1], strides = [1, 1]} : vector<128x4xf32> to vector<128x1xf32>
    %7 = vector.broadcast %6 : vector<128x1xf32> to vector<128x16xf32>
    %8 = arith.mulf %5, %7 : vector<128x16xf32>
    %9 = vector.broadcast %2 : vector<128x1xf32> to vector<128x16xf32>
    %10 = arith.addf %9, %8 : vector<128x16xf32>
    %c1 = arith.constant 1 : index
    %c0_6 = arith.constant 0 : index
    %c0_7 = arith.constant 0 : index
    %11 = vector.load %arg3[%c1, %c0_6, %c0_7] : memref<3x64x16xf32, #tpu.memory_space<vmem>>, vector<1x64x16xf32>
    %12 = vector.shape_cast %11 : vector<1x64x16xf32> to vector<64x16xf32>
    %cst_8 = arith.constant dense<0.000000e+00> : vector<128x16xf32>
    %13 = tpu.matmul %0, %12, %cst_8 {dimension_numbers = #tpu.dot_dimension_numbers<[1], [0], [0], [1], [0, 0, 1, 1], [], []>, precision = #tpu.contract_precision<fp32>} : vector<128x64xf32>, vector<64x16xf32>, vector<128x16xf32> -> vector<128x16xf32>
    %14 = vector.extract_strided_slice %1 {offsets = [0, 2], sizes = [128, 1], strides = [1, 1]} : vector<128x4xf32> to vector<128x1xf32>
    %15 = vector.broadcast %14 : vector<128x1xf32> to vector<128x16xf32>
    %16 = arith.mulf %13, %15 : vector<128x16xf32>
    %17 = arith.addf %10, %16 : vector<128x16xf32>
    %c2 = arith.constant 2 : index
    %c0_9 = arith.constant 0 : index
    %c0_10 = arith.constant 0 : index
    %18 = vector.load %arg3[%c2, %c0_9, %c0_10] : memref<3x64x16xf32, #tpu.memory_space<vmem>>, vector<1x64x16xf32>
    %19 = vector.shape_cast %18 : vector<1x64x16xf32> to vector<64x16xf32>
    %cst_11 = arith.constant dense<0.000000e+00> : vector<128x16xf32>
    %20 = tpu.matmul %0, %19, %cst_11 {dimension_numbers = #tpu.dot_dimension_numbers<[1], [0], [0], [1], [0, 0, 1, 1], [], []>, precision = #tpu.contract_precision<fp32>} : vector<128x64xf32>, vector<64x16xf32>, vector<128x16xf32> -> vector<128x16xf32>
    %21 = vector.extract_strided_slice %1 {offsets = [0, 3], sizes = [128, 1], strides = [1, 1]} : vector<128x4xf32> to vector<128x1xf32>
    %22 = vector.broadcast %21 : vector<128x1xf32> to vector<128x16xf32>
    %23 = arith.mulf %20, %22 : vector<128x16xf32>
    %24 = arith.addf %17, %23 : vector<128x16xf32>
    %c0_12 = arith.constant 0 : index
    %c0_13 = arith.constant 0 : index
    %25 = vector.load %arg4[%c0_12, %c0_13] : memref<128x16xf32, #tpu.memory_space<vmem>>, vector<128x16xf32>
    tpu.vector_store %arg4[%c0_12, %c0_13], %24 {strides = array<i32>} : memref<128x16xf32, #tpu.memory_space<vmem>>, vector<128x16xf32>,
    return
  }
  func.func @transform_0(%arg0: i32) -> (i32, i32) {
    %c0_i32 = arith.constant 0 : i32
    %c0_i32_0 = arith.constant 0 : i32
    return %arg0, %c0_i32 : i32, i32
  }
  func.func @transform_1(%arg0: i32) -> (i32, i32) {
    %c0_i32 = arith.constant 0 : i32
    %c0_i32_0 = arith.constant 0 : i32
    return %arg0, %c0_i32 : i32, i32
  }
  func.func @transform_2(%arg0: i32) -> (i32, i32, i32) {
    %c0_i32 = arith.constant 0 : i32
    %c0_i32_0 = arith.constant 0 : i32
    %c0_i32_1 = arith.constant 0 : i32
    %c0_i32_2 = arith.constant 0 : i32
    return %c0_i32, %c0_i32_0, %c0_i32_1 : i32, i32, i32
  }
  func.func @transform_3(%arg0: i32) -> (i32, i32) {
    %c0_i32 = arith.constant 0 : i32
    %c0_i32_0 = arith.constant 0 : i32
    return %arg0, %c0_i32 : i32, i32
  }
}

</mosaic_0001>

<bundles_post_ra>
// kernel: tpu_custom_call.1
= control target key start
LH: loop header
LB: loop body
LE: loop exit
PB: predicated region body
PF: predicated region fallthrough
CT: control target
= control target key end

     0   :  { %s6064_s12 = smov 0   ;;  %s7308_s0 = inlined_call_operand.vmem [shape: f32[256,64], index: 0, kind: input, shape index: {}]   ;;  %s7309_s1 = inlined_call_operand.vmem [shape: f32[256,4], index: 1, kind: input, shape index: {}]   ;;  %s7310_s2 = inlined_call_operand.vmem [shape: f32[3,64,16], index: 2, kind: input, shape index: {}]   ;;  %s7311_s3 = inlined_call_operand.vmem [shape: f32[256,16], index: 3, kind: output, shape index: {}]  }
   0x1 LB: > { %s4302_s13 = sadd.s32 4294967295, %s6038_s12   ;;  %p4306_p0 = scmp.ge.s32.totalorder %s6038_s12, 1  ;;  %s6038_s12 = sphi %s6064_s12, %s13_s12  }
   0x2   : > { %p149_p1 = scmp.lt.s32.totalorder %s6038_s12, 3 }
   0x4   : > { %p150_p2 = pnand %p4306_p0, %p149_p1 }
   0x6   : > { %153 = sbr.rel (%p150_p2) target bundleno = 539 (0x21b), region = 32 }
   0xd   : > { %v228_v0 = vld [vmem:[%s7310_s2] sm:$0xff]  ;;  %v229_v1 = vld [vmem:[%s7310_s2 + $0x8] sm:$0xff]  ;;  %v230_v2 = vld [vmem:[%s7310_s2 + $0x10] sm:$0xff]  ;;  %s4307_s20 = sshll.u32 %s4302_s13, 4  ;;  %vm236_vm0 = vcmask 523264   ;;  %vm4217_vm1 = vcmask 130048  }
   0xe   : > { %v286_v3 = vand.u32 4294901760, %v228_v0  ;;  %v289_v4 = vand.u32 4294901760, %v229_v1  ;;  %v231_v5 = vld [vmem:[%s7310_s2 + $0x18] sm:$0xff]  ;;  %v292_v6 = vand.u32 4294901760, %v230_v2  ;;  %v232_v7 = vld [vmem:[%s7310_s2 + $0x20] sm:$0xff]  ;;  %v233_v8 = vld [vmem:[%s7310_s2 + $0x28] sm:$0xff] }
   0xf   : > { %v295_v9 = vand.u32 4294901760, %v231_v5  ;;  %v298_v10 = vand.u32 4294901760, %v232_v7  ;;  %v301_v11 = vand.u32 4294901760, %v233_v8  ;;  %v234_v12 = vld [vmem:[%s7310_s2 + $0x30] sm:$0xff]  ;;  %v235_v13 = vld [vmem:[%s7310_s2 + $0x38] sm:$0xff]  ;;  %p179_p3 = scmp.lt.s32.totalorder %s4307_s20, 31 }
  0x10   : > { %v6096_v14 = vpack.c.bf16 %v289_v4, %v286_v3  ;;  %v304_v15 = vand.u32 4294901760, %v234_v12  ;;  %v307_v16 = vand.u32 4294901760, %v235_v13  ;;  %v6098_v17 = vsub.f32 %v228_v0, %v286_v3 }
  0x11   : > { %v6100_v18 = vpack.c.bf16 %v295_v9, %v292_v6  ;;  %v6102_v19 = vpack.c.bf16 %v301_v11, %v298_v10  ;;  %s7640_s20 = smov (!%p179_p3, %s4307_s20), 31  ;;  %v6104_v20 = vsub.f32 %v229_v1, %v289_v4  ;;  %v6106_v21 = vsub.f32 %v230_v2, %v292_v6 }
  0x12   : > { %5484 = vmatprep.subr.bf16.mxu1 %v6096_v14  ;;  %5532 = vmatprep.subr.bf16.mxu0 %v6096_v14  ;;  %v6110_v22 = vpack.c.bf16 %v307_v16, %v304_v15  ;;  %v521_v23 = vand.u32 4294901760, %v6098_v17  ;;  %v6113_v24 = vsub.f32 %v231_v5, %v295_v9  ;;  %v6115_v25 = vsub.f32 %v232_v7, %v298_v10  ;;  %s6119_s4 = sshll.u32 %s7640_s20, 3 }
  0x13   : > { %5486 = vmatpush3.bf16.msra.mxu1 %v6096_v14  ;;  %5534 = vmatpush3.bf16.msra.mxu0 %v6096_v14  ;;  %v528_v26 = vand.u32 4294901760, %v6104_v20  ;;  %v535_v27 = vand.u32 4294901760, %v6106_v21  ;;  %v6123_v28 = vsub.f32 %v233_v8, %v301_v11  ;;  %v6125_v29 = vsub.f32 %v234_v12, %v304_v15  ;;  %s6133_s7 = scalar_lea.vmem %s7308_s0, %s6119_s4  ;;  %s6431_s10 = scalar_lea.vmem %s7309_s1, %s6119_s4 }
  0x14   : > { %5488 = vmatprep.subr.bf16.mxu1 %v6100_v18  ;;  %5536 = vmatprep.subr.bf16.mxu0 %v6100_v18  ;;  %v522_v30 = vsub.f32 %v6098_v17, %v521_v23  ;;  %v542_v31 = vand.u32 4294901760, %v6113_v24  ;;  %v549_v32 = vand.u32 4294901760, %v6115_v25  ;;  %v6138_v33 = vsub.f32 %v235_v13, %v307_v16  ;;  %v196_v34 = vld [vmem:[%s6133_s7] sm:$0xff]  ;;  %v197_v35 = vld [vmem:[%s6133_s7 + $0x8] sm:$0xff]  ;;  %v198_v38 = vld [vmem:[%s6133_s7 + $0x10] sm:$0xff]  ;;  %s7234_s21 = scalar_lea.vmem %s7311_s3, %s6119_s4 }
  0x15   : > { %v529_v36 = vsub.f32 %v6104_v20, %v528_v26  ;;  %v6143_v37 = vpack.c.bf16 %v528_v26, %v521_v23  ;;  %v536_v39 = vsub.f32 %v6106_v21, %v535_v27  ;;  %v556_v40 = vand.u32 4294901760, %v6123_v28  ;;  %v199_v45 = vld [vmem:[%s6133_s7 + $0x18] sm:$0xff]  ;;  %v200_v46 = vld [vmem:[%s6133_s7 + $0x20] sm:$0xff]  ;;  %v201_v51 = vld [vmem:[%s6133_s7 + $0x28] sm:$0xff] }
  0x16   : > { %v238_v41 = vsel %vm236_vm0, %v196_v34, 0  ;;  %v241_v42 = vsel %vm236_vm0, %v197_v35, 0  ;;  %v523_v43 = vand.u32 4294901760, %v522_v30  ;;  %v244_v44 = vsel %vm236_vm0, %v198_v38, 0  ;;  %v202_v0 = vld [vmem:[%s6133_s7 + $0x30] sm:$0xff]  ;;  %v203_v13 = vld [vmem:[%s6133_s7 + $0x38] sm:$0xff] }
  0x17   : > { %5490 = vmatpush3.bf16.msra.mxu1 %v6100_v18  ;;  %5538 = vmatpush3.bf16.msra.mxu0 %v6100_v18  ;;  %v6155_v47 = vand.u32 4294901760, %v238_v41  ;;  %v6157_v48 = vand.u32 4294901760, %v241_v42  ;;  %v530_v49 = vand.u32 4294901760, %v529_v36  ;;  %v6159_v50 = vand.u32 4294901760, %v244_v44  ;;  %v205_v30 = vld [vmem:[%s6133_s7 + $0x48] sm:$0xff] }
  0x18   : > { %5492 = vmatprep.subr.bf16.mxu1 %v6102_v19  ;;  %5540 = vmatprep.subr.bf16.mxu0 %v6102_v19  ;;  %v247_v52 = vsel %vm236_vm0, %v199_v45, 0  ;;  %v250_v53 = vsel %vm236_vm0, %v200_v46, 0  ;;  %v253_v54 = vsel %vm236_vm0, %v201_v51, 0  ;;  %v537_v55 = vand.u32 4294901760, %v536_v39 }
  0x19   : > { %7459 = vst [vmem:[#allocation2_spill] sm:$0xff] %v6155_v47  ;;  %7460 = vst [vmem:[#allocation3_spill] sm:$0xff] %v6157_v48  ;;  %v6168_v56 = vsub.f32 %v238_v41, %v6155_v47  ;;  %v6171_v57 = vsub.f32 %v241_v42, %v6157_v48  ;;  %v5499_v58 = vpack.c.bf16 %v530_v49, %v523_v43  ;;  %v6176_v60 = vand.u32 4294901760, %v247_v52  ;;  %v206_v49 = vld [vmem:[%s6133_s7 + $0x50] sm:$0xff] }
  0x1a   : > { %v6174_v59 = vsub.f32 %v244_v44, %v6159_v50  ;;  %v6178_v61 = vand.u32 4294901760, %v250_v53  ;;  %v6180_v62 = vand.u32 4294901760, %v253_v54  ;;  %v543_v63 = vsub.f32 %v6113_v24, %v542_v31 }
  0x1b   : > { %7461 = vst [vmem:[#allocation4_spill] sm:$0xff] %v6168_v56  ;;  %7462 = vst [vmem:[#allocation5_spill] sm:$0xff] %v6171_v57  ;;  %5494 = vmatpush3.bf16.msra.mxu1 %v6102_v19  ;;  %5542 = vmatpush3.bf16.msra.mxu0 %v6102_v19  ;;  %v6187_v1 = vand.u32 4294901760, %v6168_v56  ;;  %v6190_v2 = vand.u32 4294901760, %v6171_v57  ;;  %v6195_v4 = vpack.c.bf16 %v542_v31, %v535_v27  ;;  %v256_v12 = vsel %vm236_vm0, %v202_v0, 0  ;;  %v204_v27 = vld [vmem:[%s6133_s7 + $0x40] sm:$0xff] }
  0x1c   : > { %7463 = vst [vmem:[#allocation6_spill] sm:$0xff] %v6174_v59  ;;  %v6193_v3 = vand.u32 4294901760, %v6174_v59  ;;  %5496 = vmatprep.subr.bf16.mxu1 %v6110_v22  ;;  %5544 = vmatprep.subr.bf16.mxu0 %v6110_v22  ;;  %v6200_v5 = vsub.f32 %v247_v52, %v6176_v60  ;;  %v6203_v6 = vsub.f32 %v250_v53, %v6178_v61  ;;  %v544_v8 = vand.u32 4294901760, %v543_v63 }
  0x1d   : > { %7464 = vst [vmem:[#allocation7_spill] sm:$0xff] %v6187_v1  ;;  %7465 = vst [vmem:[#allocation8_spill] sm:$0xff] %v6190_v2  ;;  %v6206_v7 = vsub.f32 %v253_v54, %v6180_v62  ;;  %v361_v9 = vsub.f32 %v6168_v56, %v6187_v1  ;;  %4899 = vmatprep.mubr.f32.mxu0 %v6187_v1  ;;  %v371_v10 = vsub.f32 %v6171_v57, %v6190_v2 }
  0x1e   : > { %7466 = vst [vmem:[#allocation9_spill] sm:$0xff] %v6193_v3  ;;  %7467 = vst [vmem:[#allocation10_spill] sm:$0xff] %v6200_v5  ;;  %v381_v11 = vsub.f32 %v6174_v59, %v6193_v3  ;;  %v6218_v15 = vand.u32 4294901760, %v6200_v5  ;;  %v6221_v16 = vand.u32 4294901760, %v6203_v6  ;;  %v5503_v26 = vpack.c.bf16 %v544_v8, %v537_v55 }
  0x1f   : > { %7468 = vst [vmem:[#allocation11_spill] sm:$0xff] %v6203_v6  ;;  %7469 = vst [vmem:[#allocation12_spill] sm:$0xff] %v6206_v7  ;;  %v6224_v23 = vand.u32 4294901760, %v6206_v7  ;;  %5498 = vmatpush3.bf16.msra.mxu1 %v6110_v22  ;;  %5546 = vmatpush3.bf16.msra.mxu0 %v6110_v22  ;;  %v6230_v31 = vand.u32 4294901760, %v361_v9  ;;  %v6232_v34 = vand.u32 4294901760, %v371_v10  ;;  %v6236_v36 = vand.u32 4294901760, %v256_v12 }
  0x20   : > { %7470 = vst [vmem:[#allocation13_spill] sm:$0xff] %v6218_v15  ;;  %7471 = vst [vmem:[#allocation14_spill] sm:$0xff] %v6221_v16  ;;  %v6234_v35 = vand.u32 4294901760, %v381_v11  ;;  %5500 = vmatprep.subr.bf16.mxu1 %v5499_v58  ;;  %5548 = vmatprep.subr.bf16.mxu0 %v6143_v37  ;;  %v391_v38 = vsub.f32 %v6200_v5, %v6218_v15  ;;  %v401_v39 = vsub.f32 %v6203_v6, %v6221_v16  ;;  %v207_v9 = vld [vmem:[%s6133_s7 + $0x58] sm:$0xff] }
  0x21   : > { %7472 = vst [vmem:[#allocation15_spill] sm:$0xff] %v6224_v23  ;;  %7473 = vst [vmem:[#allocation16_spill] sm:$0xff] %v6230_v31  ;;  %v411_v41 = vsub.f32 %v6206_v7, %v6224_v23  ;;  %v259_v42 = vsel %vm236_vm0, %v203_v13, 0  ;;  %4779 = vmatprep.mubr.f32.mxu1 %v6230_v31  ;;  %v6248_v43 = vsub.f32 %v256_v12, %v6236_v36  ;;  %v262_v45 = vsel %vm236_vm0, %v204_v27, 0  ;;  %v6605_v31 = vld [vmem:[%s6431_s10 + $0x50] sm:$0xff] }
  0x22   : > { %7474 = vst [vmem:[#allocation17_spill] sm:$0xff] %v6232_v34  ;;  %7475 = vst [vmem:[#allocation18_spill] sm:$0xff] %v6234_v35  ;;  %v6250_v44 = vand.u32 4294901760, %v259_v42  ;;  %v265_v46 = vsel %vm236_vm0, %v205_v30, 0  ;;  %4780 = vmatmul.mubr.f32.vlgmr.msra.gmra.mrb[0].mxu1 %v6232_v34  ;;  %4900 = vmatmul.mubr.f32.vlgmr.msra.gmra.mrb[0].mxu0 %v6190_v2  ;;  %v6257_v51 = vand.u32 4294901760, %v391_v38  ;;  %v6259_v52 = vand.u32 4294901760, %v401_v39 }
  0x23   : > { %7476 = vst [vmem:[#allocation19_spill] sm:$0xff] %v6248_v43  ;;  %v6261_v53 = vand.u32 4294901760, %v411_v41  ;;  %v6263_v54 = vand.u32 4294901760, %v262_v45  ;;  %5502 = vmatpush3.bf16.msra.mxu1 %v5499_v58  ;;  %4782 = vmatprep.mubr.f32.mxu1 %v6234_v35  ;;  %v6267_v55 = vand.u32 4294901760, %v6248_v43  ;;  %v6272_v0 = vand.u32 4294901760, %v265_v46  ;;  %v208_v38 = vld [vmem:[%s6133_s7 + $0x60] sm:$0xff] }
  0x24   : > { %7477 = vst [vmem:[#allocation20_spill] sm:$0xff] %v6257_v51  ;;  %7478 = vst [vmem:[#allocation21_spill] sm:$0xff] %v6259_v52  ;;  %v6270_v63 = vsub.f32 %v259_v42, %v6250_v44  ;;  %v550_v8 = vsub.f32 %v6115_v25, %v549_v32  ;;  %4902 = vmatprep.mubr.f32.mxu0 %v6193_v3  ;;  %5550 = vmatpush3.bf16.msra.mxu0 %v6143_v37  ;;  %v268_v12 = vsel %vm236_vm0, %v206_v49, 0 }
  0x25   : > { %7479 = vst [vmem:[#allocation22_spill] sm:$0xff] %v6261_v53  ;;  %7480 = vst [vmem:[#allocation23_spill] sm:$0xff] %v6267_v55  ;;  %v6281_v58 = vsub.f32 %v262_v45, %v6263_v54  ;;  %v557_v10 = vsub.f32 %v6123_v28, %v556_v40  ;;  %v5555_v11 = vpack.c.bf16 %v556_v40, %v549_v32  ;;  %5504 = vmatprep.subr.bf16.mxu1 %v5503_v26 }
  0x26   : > { %7481 = vst [vmem:[#allocation24_spill] sm:$0xff] %v6270_v63  ;;  %5552 = vmatprep.subr.bf16.mxu0 %v6195_v4  ;;  %v421_v37 = vsub.f32 %v6248_v43, %v6267_v55  ;;  %v6295_v13 = vand.u32 4294901760, %v6270_v63  ;;  %v6298_v27 = vsub.f32 %v265_v46, %v6272_v0  ;;  %v551_v30 = vand.u32 4294901760, %v550_v8  ;;  %4783 = vmatmul.mubr.f32.gmra.mrb[2].mxu1 %v6257_v51  ;;  %v209_v8 = vld [vmem:[%s6133_s7 + $0x68] sm:$0xff]  ;;  %v211_v51 = vld [vmem:[%s6133_s7 + $0x78] sm:$0xff] }
  0x27   : > { %7482 = vst [vmem:[#allocation25_spill] sm:$0xff] %v6281_v58  ;;  %4903 = vmatmul.mubr.f32.gmra.mrb[2].mxu0 %v6218_v15  ;;  %v6304_v32 = vand.u32 4294901760, %v6281_v58  ;;  %v558_v40 = vand.u32 4294901760, %v557_v10  ;;  %v6306_v39 = vand.u32 4294901760, %v268_v12  ;;  %v271_v41 = vsel %vm236_vm0, %v207_v9, 0  ;;  %4785 = vmatprep.mubr.f32.mxu1 %v6259_v52  ;;  %7521 = vst [vmem:[#allocation64_spill] sm:$0xff] %v6605_v31 }
  0x28   : > { %7483 = vst [vmem:[#allocation26_spill] sm:$0xff] %v6295_v13  ;;  %7484 = vst [vmem:[#allocation27_spill] sm:$0xff] %v6298_v27  ;;  %4905 = vmatprep.mubr.f32.mxu0 %v6221_v16  ;;  %v6311_v42 = vand.u32 4294901760, %v421_v37  ;;  %v431_v45 = vsub.f32 %v6270_v63, %v6295_v13  ;;  %v6316_v46 = vand.u32 4294901760, %v6298_v27  ;;  %v6318_v49 = vand.u32 4294901760, %v271_v41  ;;  %5506 = vmatpush3.bf16.msra.mxu1 %v5503_v26  ;;  %v210_v26 = vld [vmem:[%s6133_s7 + $0x70] sm:$0xff] }
  0x29   : > { %7485 = vst [vmem:[#allocation28_spill] sm:$0xff] %v6304_v32  ;;  %5554 = vmatpush3.bf16.msra.mxu0 %v6195_v4  ;;  %v441_v9 = vsub.f32 %v6281_v58, %v6304_v32  ;;  %v5507_v10 = vpack.c.bf16 %v558_v40, %v551_v30  ;;  %v6325_v16 = vsub.f32 %v268_v12, %v6306_v39  ;;  %v274_v37 = vsel %vm236_vm0, %v208_v38, 0 }
  0x2a   : > { %7486 = vst [vmem:[#allocation29_spill] sm:$0xff] %v6311_v42  ;;  %7487 = vst [vmem:[#allocation30_spill] sm:$0xff] %v6316_v46  ;;  %v451_v15 = vsub.f32 %v6298_v27, %v6316_v46  ;;  %5556 = vmatprep.subr.bf16.mxu0 %v5555_v11  ;;  %v6331_v3 = vsub.f32 %v271_v41, %v6318_v49  ;;  %v6333_v2 = vand.u32 4294901760, %v274_v37  ;;  %4786 = vmatmul.mubr.f32.gmra.mrb[4].mxu1 %v6261_v53 }
  0x2b   : > { %7488 = vst [vmem:[#allocation31_spill] sm:$0xff] %v6325_v16  ;;  %4906 = vmatmul.mubr.f32.gmra.mrb[4].mxu0 %v6224_v23  ;;  %v6338_v4 = vand.u32 4294901760, %v431_v45  ;;  %v6341_v12 = vand.u32 4294901760, %v6325_v16  ;;  %v277_v30 = vsel %vm236_vm0, %v209_v8, 0  ;;  %v563_v38 = vand.u32 4294901760, %v6125_v29  ;;  %4788 = vmatprep.mubr.f32.mxu1 %v6311_v42 }
  0x2c   : > { %7489 = vst [vmem:[#allocation32_spill] sm:$0xff] %v6331_v3  ;;  %4908 = vmatprep.mubr.f32.mxu0 %v6267_v55  ;;  %v6347_v40 = vand.u32 4294901760, %v441_v9  ;;  %v6350_v41 = vand.u32 4294901760, %v6331_v3  ;;  %v6353_v45 = vsub.f32 %v274_v37, %v6333_v2  ;;  %v6355_v23 = vand.u32 4294901760, %v277_v30  ;;  %5508 = vmatprep.subr.bf16.mxu1 %v5507_v10 }
  0x2d   : > { %7490 = vst [vmem:[#allocation33_spill] sm:$0xff] %v6338_v4  ;;  %7491 = vst [vmem:[#allocation34_spill] sm:$0xff] %v6341_v12  ;;  %v461_v8 = vsub.f32 %v6325_v16, %v6341_v12  ;;  %5558 = vmatpush3.bf16.msra.mxu0 %v5555_v11  ;;  %v564_v1 = vsub.f32 %v6125_v29, %v563_v38  ;;  %v570_v55 = vand.u32 4294901760, %v6138_v33  ;;  %v280_v9 = vsel %vm236_vm0, %v210_v26, 0 }
  0x2e   : > { %7492 = vst [vmem:[#allocation35_spill] sm:$0xff] %v6347_v40  ;;  %7493 = vst [vmem:[#allocation36_spill] sm:$0xff] %v6350_v41  ;;  %v6362_v42 = vand.u32 4294901760, %v451_v15  ;;  %5510 = vmatpush3.bf16.msra.mxu1 %v5507_v10  ;;  %v6365_v53 = vand.u32 4294901760, %v6353_v45  ;;  %v6368_v37 = vsub.f32 %v277_v30, %v6355_v23  ;;  %v6370_v52 = vand.u32 4294901760, %v280_v9 }
  0x2f   : > { %7494 = vst [vmem:[#allocation37_spill] sm:$0xff] %v6353_v45  ;;  %4789 = vmatmul.mubr.f32.gmra.mrb[6].mxu1 %v6338_v4  ;;  %4909 = vmatmul.mubr.f32.gmra.mrb[6].mxu0 %v6295_v13  ;;  %v471_v11 = vsub.f32 %v6331_v3, %v6350_v41  ;;  %v565_v26 = vand.u32 4294901760, %v564_v1  ;;  %v571_v15 = vsub.f32 %v6138_v33, %v570_v55  ;;  %v6380_v30 = vand.u32 4294901760, %v461_v8 }
  0x30   : > { %7495 = vst [vmem:[#allocation38_spill] sm:$0xff] %v6362_v42  ;;  %7496 = vst [vmem:[#allocation39_spill] sm:$0xff] %v6365_v53  ;;  %v5559_v10 = vpack.c.bf16 %v570_v55, %v563_v38  ;;  %4791 = vmatprep.mubr.f32.mxu1 %v6347_v40  ;;  %4911 = vmatprep.mubr.f32.mxu0 %v6304_v32  ;;  %v481_v35 = vsub.f32 %v6353_v45, %v6365_v53  ;;  %v6385_v4 = vand.u32 4294901760, %v6368_v37 }
  0x31   : > { %7497 = vst [vmem:[#allocation40_spill] sm:$0xff] %v6368_v37  ;;  %7498 = vst [vmem:[#allocation41_spill] sm:$0xff] %v6380_v30  ;;  %v6388_v13 = vsub.f32 %v280_v9, %v6370_v52  ;;  %v572_v34 = vand.u32 4294901760, %v571_v15  ;;  %v283_v1 = vsel %vm236_vm0, %v211_v51, 0  ;;  %v6398_v8 = vand.u32 4294901760, %v471_v11 }
  0x32   : > { %7499 = vst [vmem:[#allocation42_spill] sm:$0xff] %v6385_v4  ;;  %5560 = vmatprep.subr.bf16.mxu0 %v5559_v10  ;;  %v6394_v38 = vand.u32 4294901760, %v283_v1  ;;  %v491_v9 = vsub.f32 %v6368_v37, %v6385_v4  ;;  %v6404_v51 = vand.u32 4294901760, %v481_v35  ;;  %v5515_v11 = vpack.c.bf16 %v6104_v20, %v6098_v17 }
  0x33   : > { %7500 = vst [vmem:[#allocation43_spill] sm:$0xff] %v6388_v13  ;;  %v6392_v55 = vand.u32 4294901760, %v6388_v13  ;;  %5562 = vmatpush3.bf16.msra.mxu0 %v5559_v10  ;;  %4792 = vmatmul.mubr.f32.gmra.mrb[8].mxu1 %v6362_v42  ;;  %7503 = vst [vmem:[#allocation46_spill] sm:$0xff] %v6398_v8  ;;  %v5511_v32 = vpack.c.bf16 %v572_v34, %v565_v26 }
  0x34   : > { %7502 = vst [vmem:[#allocation45_spill] sm:$0xff] %v6394_v38  ;;  %4912 = vmatmul.mubr.f32.gmra.mrb[8].mxu0 %v6316_v46  ;;  %4794 = vmatprep.mubr.f32.mxu1 %v6380_v30  ;;  %7504 = vst [vmem:[#allocation47_spill] sm:$0xff] %v6404_v51  ;;  %v6409_v10 = vsub.f32 %v283_v1, %v6394_v38  ;;  %v6419_v35 = vand.u32 4294901760, %v491_v9  ;;  %v6441_v1 = vld [vmem:[%s6431_s10] sm:$0xff]  ;;  %v6040_v9 = vmov 1   ;;  %v6557_v46 = vld [vmem:[%s6431_s10 + $0x48] sm:$0xff] }
  0x35   : > { %7501 = vst [vmem:[#allocation44_spill] sm:$0xff] %v6392_v55  ;;  %4914 = vmatprep.mubr.f32.mxu0 %v6341_v12  ;;  %v501_v15 = vsub.f32 %v6388_v13, %v6392_v55  ;;  %5512 = vmatprep.subr.bf16.mxu1 %v5511_v32  ;;  %7511 = vst [vmem:[#allocation54_spill] sm:$0xff] %v6441_v1  ;;  %v4324_v12 = vld [vmem:[%s7310_s2 + $0x98] sm:$0xff] }
  0x36   : > { %7505 = vst [vmem:[#allocation48_spill] sm:$0xff] %v6409_v10  ;;  %5564 = vmatprep.subr.bf16.mxu0 %v6096_v14  ;;  %5514 = vmatpush3.bf16.msra.mxu1 %v5511_v32  ;;  %v6415_v34 = vand.u32 4294901760, %v6409_v10  ;;  %7507 = vst [vmem:[#allocation50_spill] sm:$0xff] %v6419_v35  ;;  %v6438_v32 = vld [vmem:[%s6431_s10 + $0x10] sm:$0xff] }
  0x37   : > { %4795 = vmatmul.mubr.f32.gmra.mrb[10].mxu1 %v6398_v8  ;;  %v6423_v26 = vand.u32 4294901760, %v501_v15  ;;  %5516 = vmatprep.subr.bf16.mxu1 %v5515_v11  ;;  %7510 = vst [vmem:[#allocation53_spill] sm:$0xff] %v6438_v32  ;;  %v6450_v15 = vld [vmem:[%s6431_s10 + $0x18] sm:$0xff]  ;;  %7518 = vst [vmem:[#allocation61_spill] sm:$0xff] %v6557_v46  ;;  %v6584_v8 = vld [vmem:[%s7310_s2 + $0xa8] sm:$0xff] }
  0x38   : > { %7506 = vst [vmem:[#allocation49_spill] sm:$0xff] %v6415_v34  ;;  %4915 = vmatmul.mubr.f32.gmra.mrb[10].mxu0 %v6350_v41  ;;  %4797 = vmatprep.mubr.f32.mxu1 %v6404_v51  ;;  %v511_v17 = vsub.f32 %v6409_v10, %v6415_v34  ;;  %7512 = vst [vmem:[#allocation55_spill] sm:$0xff] %v6450_v15  ;;  %v6549_v41 = vld [vmem:[%s7310_s2 + $0x90] sm:$0xff]  ;;  %v6579_v51 = vld [vmem:[%s7310_s2 + $0xa0] sm:$0xff] }
  0x39   : > { %4917 = vmatprep.mubr.f32.mxu0 %v6365_v53  ;;  %7508 = vst [vmem:[#allocation51_spill] sm:$0xff] %v6423_v26  ;;  %6024 = vset.pattern.permute.xlu1 %v6040_v9 }
  0x3a   : > { %v6435_v20 = vand.u32 4294901760, %v511_v17  ;;  %6023 = vset.pattern.permute.xlu0 %v6040_v9  ;;  %1479 = vperm.xlu1 %6024, %v6438_v32   ;;  %v6453_v17 = vld [vmem:[%s6431_s10 + $0x8] sm:$0xff] }
  0x3b   : > { %4798 = vmatmul.mubr.f32.gmra.mrb[12].mxu1 %v6419_v35  ;;  %1469 = vperm.xlu0 %6023, %v6441_v1   ;;  %7513 = vst [vmem:[#allocation56_spill] sm:$0xff] %v6453_v17 }
  0x3c   : > { %4918 = vmatmul.mubr.f32.gmra.mrb[12].mxu0 %v6385_v4  ;;  %7509 = vst [vmem:[#allocation52_spill] sm:$0xff] %v6435_v20  ;;  %4800 = vmatprep.mubr.f32.mxu1 %v6423_v26  ;;  %v6567_v26 = vld [vmem:[%s7310_s2 + $0x60] sm:$0xff] }
  0x3d   : > { %4920 = vmatprep.mubr.f32.mxu0 %v6392_v55  ;;  %v5519_v55 = vpack.c.bf16 %v6113_v24, %v6106_v21  ;;  %v5523_v21 = vpack.c.bf16 %v6123_v28, %v6115_v25  ;;  %v6472_v24 = vld [vmem:[%s7310_s2 + $0x40] sm:$0xff]  ;;  %v6489_v25 = vld [vmem:[%s7310_s2 + $0x88] sm:$0xff]  ;;  %v5527_v28 = vpack.c.bf16 %v6138_v33, %v6125_v29 }
  0x3e   : > { %1484 = vperm.xlu1 %6024, %v6450_v15   ;;  %v1653_v9 = vand.u32 4294901760, %v6472_v24  ;;  %v2943_v53 = vand.u32 4294901760, %v6489_v25  ;;  %v6522_v33 = vld [vmem:[%s6431_s10 + $0x20] sm:$0xff]  ;;  %v6602_v15 = vld [vmem:[%s6431_s10 + $0x58] sm:$0xff] }
  0x3f   : > { %4801 = vmatmul.mubr.f32.gmra.mrb[14].mxu1 %v6435_v20  ;;  %1474 = vperm.xlu0 %6023, %v6453_v17   ;;  %7515 = vst [vmem:[#allocation58_spill] sm:$0xff] %v6522_v33  ;;  %v6560_v20 = vld [vmem:[%s6431_s10 + $0x40] sm:$0xff]  ;;  %7520 = vst [vmem:[#allocation63_spill] sm:$0xff] %v6602_v15 }
  0x40   : > { %4921 = vmatmul.mubr.f32.gmra.mrb[14].mxu0 %v6415_v34  ;;  %4819 = vmatprep.mubr.f32.mxu1 %v6155_v47  ;;  %7519 = vst [vmem:[#allocation62_spill] sm:$0xff] %v6560_v20  ;;  %v6588_v30 = vsub.f32 %v6472_v24, %v1653_v9  ;;  %v6599_v32 = vsub.f32 %v6489_v25, %v2943_v53  ;;  %v6628_v25 = vld [vmem:[%s7310_s2 + $0xb0] sm:$0xff] }
  0x41   : > { %4939 = vmatprep.mubr.f32.mxu0 %v6155_v47 }
  0x42   : > { %v1888_v24 = vand.u32 4294901760, %v6588_v30 }
  0x43   : > { %4820 = vmatmul.mubr.f32.vlgmr.msra.gmra.mrb[0].mxu1 %v6157_v48  ;;  %1489 = vperm.xlu0 %6023, %v6522_v33   ;;  %v2946_v33 = vand.u32 4294901760, %v6549_v41 }
  0x44   : > { %4940 = vmatmul.mubr.f32.vlgmr.msra.gmra.mrb[0].mxu0 %v6157_v48  ;;  %5518 = vmatpush3.bf16.msra.mxu1 %v5515_v11  ;;  %v6479_v11 = vld [vmem:[%s7310_s2 + $0x48] sm:$0xff] }
  0x45   : > { %4822 = vmatprep.mubr.f32.mxu1 %v6159_v50  ;;  %4942 = vmatprep.mubr.f32.mxu0 %v6159_v50  ;;  %v1656_v34 = vand.u32 4294901760, %v6479_v11 }
  0x46   : > { %5566 = vmatpush3.bf16.msra.mxu0 %v6096_v14  ;;  %5520 = vmatprep.subr.bf16.mxu1 %v5519_v55  ;;  %v6484_v14 = vld [vmem:[%s7310_s2 + $0x80] sm:$0xff] }
  0x47   : > { %5568 = vmatprep.subr.bf16.mxu0 %v6100_v18  ;;  %4823 = vmatmul.mubr.f32.gmra.mrb[2].mxu1 %v6176_v60  ;;  %v2940_v4 = vand.u32 4294901760, %v6484_v14  ;;  %v6591_v42 = vsub.f32 %v6479_v11, %v1656_v34  ;;  %v6637_v11 = vld [vmem:[%s7310_s2 + $0xb8] sm:$0xff] }
  0x48   : > { %4943 = vmatmul.mubr.f32.gmra.mrb[2].mxu0 %v6176_v60  ;;  %4825 = vmatprep.mubr.f32.mxu1 %v6178_v61 }
  0x49   : > { %4945 = vmatprep.mubr.f32.mxu0 %v6178_v61  ;;  %5522 = vmatpush3.bf16.msra.mxu1 %v5519_v55  ;;  %v6509_v29 = vpack.c.bf16 %v2943_v53, %v2940_v4  ;;  %v6534_v55 = vld [vmem:[%s6431_s10 + $0x30] sm:$0xff]  ;;  %v6596_v40 = vsub.f32 %v6484_v14, %v2940_v4  ;;  %v6621_v14 = vld [vmem:[%s7310_s2 + $0x78] sm:$0xff] }
  0x4a   : > { %5570 = vmatpush3.bf16.msra.mxu0 %v6100_v18  ;;  %5524 = vmatprep.subr.bf16.mxu1 %v5523_v21  ;;  %v6507_v18 = vpack.c.bf16 %v1656_v34, %v1653_v9  ;;  %7517 = vst [vmem:[#allocation60_spill] sm:$0xff] %v6534_v55  ;;  %v6616_v53 = vld [vmem:[%s7310_s2 + $0x70] sm:$0xff]  ;;  %v1895_v34 = vand.u32 4294901760, %v6591_v42 }
  0x4b   : > { %5572 = vmatprep.subr.bf16.mxu0 %v6102_v19  ;;  %4826 = vmatmul.mubr.f32.gmra.mrb[4].mxu1 %v6180_v62 }
  0x4c   : > { %4946 = vmatmul.mubr.f32.gmra.mrb[4].mxu0 %v6180_v62  ;;  %4828 = vmatprep.mubr.f32.mxu1 %v6236_v36  ;;  %v6662_v17 = vpack.c.bf16 %v1895_v34, %v1888_v24 }
  0x4d   : > { %4948 = vmatprep.mubr.f32.mxu0 %v6236_v36  ;;  %5526 = vmatpush3.bf16.msra.mxu1 %v5523_v21  ;;  %v4315_v21 = vld [vmem:[%s7310_s2 + $0x50] sm:$0xff] }
  0x4e   : > { %5574 = vmatpush3.bf16.msra.mxu0 %v6102_v19  ;;  %5528 = vmatprep.subr.bf16.mxu1 %v5527_v28  ;;  %v6519_v19 = vld [vmem:[%s6431_s10 + $0x28] sm:$0xff]  ;;  %v1659_v35 = vand.u32 4294901760, %v4315_v21  ;;  %7530 = vst [vmem:[#allocation69_spill] sm:$0xff] %v6662_v17 }
  0x4f   : > { %5576 = vmatprep.subr.bf16.mxu0 %v6110_v22  ;;  %4829 = vmatmul.mubr.f32.gmra.mrb[6].mxu1 %v6250_v44  ;;  %7514 = vst [vmem:[#allocation57_spill] sm:$0xff] %v6519_v19 }
  0x50   : > { %4949 = vmatmul.mubr.f32.gmra.mrb[6].mxu0 %v6250_v44  ;;  %4831 = vmatprep.mubr.f32.mxu1 %v6263_v54 }
  0x51   : > { %4951 = vmatprep.mubr.f32.mxu0 %v6263_v54  ;;  %5530 = vmatpush3.bf16.msra.mxu1 %v5527_v28  ;;  %v4316_v28 = vld [vmem:[%s7310_s2 + $0x58] sm:$0xff] }
  0x52   : > { %5578 = vmatpush3.bf16.msra.mxu0 %v6110_v22  ;;  %5580 = vmatprep.subr.bf16.mxu1 %v6507_v18  ;;  %v6531_v22 = vld [vmem:[%s6431_s10 + $0x38] sm:$0xff] }
  0x53   : > { %5676 = vmatprep.subr.bf16.mxu0 %v6509_v29  ;;  %4832 = vmatmul.mubr.f32.gmra.mrb[8].mxu1 %v6272_v0  ;;  %7516 = vst [vmem:[#allocation59_spill] sm:$0xff] %v6531_v22 }
  0x54   : > { %4952 = vmatmul.mubr.f32.gmra.mrb[8].mxu0 %v6272_v0  ;;  %4834 = vmatprep.mubr.f32.mxu1 %v6306_v39 }
  0x55   : > { %4954 = vmatprep.mubr.f32.mxu0 %v6306_v39  ;;  %1494 = vperm.xlu1 %6024, %v6519_v19   ;;  %v2949_v19 = vand.u32 4294901760, %v4324_v12 }
  0x56   : > { %1499 = vperm.xlu0 %6023, %v6534_v55   ;;  %v1662_v55 = vand.u32 4294901760, %v4316_v28 }
  0x57   : > { %4835 = vmatmul.mubr.f32.gmra.mrb[10].mxu1 %v6318_v49  ;;  %v6632_v4 = vpack.c.bf16 %v2949_v19, %v2946_v33 }
  0x58   : > { %4955 = vmatmul.mubr.f32.gmra.mrb[10].mxu0 %v6318_v49  ;;  %4837 = vmatprep.mubr.f32.mxu1 %v6333_v2  ;;  %v6630_v9 = vpack.c.bf16 %v1662_v55, %v1659_v35 }
  0x59   : > { %4957 = vmatprep.mubr.f32.mxu0 %v6333_v2  ;;  %1504 = vperm.xlu1 %6024, %v6531_v22   ;;  %v6574_v22 = vld [vmem:[%s7310_s2 + $0x68] sm:$0xff]  ;;  %7523 = vst [vmem:[#allocation66_spill] sm:$0xff] %v6632_v4 }
  0x5a   : > { %1509 = vperm.xlu0 %6023, %v6560_v20   ;;  %7522 = vst [vmem:[#allocation65_spill] sm:$0xff] %v6630_v9  ;;  %v3175_v20 = vand.u32 4294901760, %v6596_v40  ;;  %v7525_v10 = vand.u32 4294901760, %v6574_v22 }
  0x5b   : > { %4838 = vmatmul.mubr.f32.gmra.mrb[12].mxu1 %v6355_v23 }
  0x5c   : > { %4958 = vmatmul.mubr.f32.gmra.mrb[12].mxu0 %v6355_v23  ;;  %4840 = vmatprep.mubr.f32.mxu1 %v6370_v52 }
  0x5d   : > { %4960 = vmatprep.mubr.f32.mxu0 %v6370_v52  ;;  %1514 = vperm.xlu1 %6024, %v6557_v46   ;;  %v3182_v46 = vand.u32 4294901760, %v6599_v32 }
  0x5e   : > { %1519 = vperm.xlu0 %6023, %v6605_v31   ;;  %v7527_v31 = vand.u32 4294901760, %v6579_v51 }
  0x5f   : > { %4841 = vmatmul.mubr.f32.gmra.mrb[14].mxu1 %v6394_v38 }
  0x60   : > { %4961 = vmatmul.mubr.f32.gmra.mrb[14].mxu0 %v6394_v38  ;;  %4859 = vmatprep.mubr.f32.mxu1 %v6168_v56  ;;  %v7524_v38 = vand.u32 4294901760, %v6567_v26  ;;  %v7528_v56 = vand.u32 4294901760, %v6584_v8 }
  0x61   : > { %4979 = vmatprep.mubr.f32.mxu0 %v6155_v47  ;;  %1524 = vperm.xlu1 %6024, %v6602_v15   ;;  %v6679_v47 = vsub.f32 %v4324_v12, %v2949_v19  ;;  %v7532_v12 = vand.u32 4294901760, %v6616_v53 }
  0x62   : > { %v6653_v1 = vpack.c.bf16 %v7525_v10, %v7524_v38  ;;  %v6659_v15 = vpack.c.bf16 %v7528_v56, %v7527_v31  ;;  %v6669_v38 = vsub.f32 %v4316_v28, %v1662_v55  ;;  %v6671_v10 = vpack.c.bf16 %v3182_v46, %v3175_v20 }
  0x63   : > { %4860 = vmatmul.mubr.f32.vlgmr.msra.gmra.mrb[0].mxu1 %v6171_v57  ;;  %v7412_v57 = vand.u32 4294901760, %v6637_v11  ;;  %v1889_v56 = vsub.f32 %v6588_v30, %v1888_v24  ;;  %v6677_v31 = vsub.f32 %v6549_v41, %v2946_v33  ;;  %v3176_v55 = vsub.f32 %v6596_v40, %v3175_v20 }
  0x64   : > { %4980 = vmatmul.mubr.f32.vlgmr.msra.gmra.mrb[0].mxu0 %v6157_v48  ;;  %7526 = vst [vmem:[#allocation67_spill] sm:$0xff] %v6653_v1  ;;  %7529 = vst [vmem:[#allocation68_spill] sm:$0xff] %v6659_v15  ;;  %5582 = vmatpush3.bf16.msra.mxu1 %v6507_v18  ;;  %v6667_v48 = vsub.f32 %v4315_v21, %v1659_v35  ;;  %v1896_v35 = vsub.f32 %v6591_v42, %v1895_v34  ;;  %v7533_v41 = vand.u32 4294901760, %v6621_v14 }
  0x65   : > { %4862 = vmatprep.mubr.f32.mxu1 %v6174_v59  ;;  %7531 = vst [vmem:[#allocation70_spill] sm:$0xff] %v6671_v10  ;;  %4982 = vmatprep.mubr.f32.mxu0 %v6159_v50  ;;  %v3183_v21 = vsub.f32 %v6599_v32, %v3182_v46  ;;  %v7535_v33 = vand.u32 4294901760, %v6628_v25  ;;  %v1909_v28 = vand.u32 4294901760, %v6669_v38  ;;  %v3189_v34 = vand.u32 4294901760, %v6677_v31  ;;  %v7556_v59 = vld [vmem:[#allocation55_spill] sm:$0xff] }
  0x66   : > { %5678 = vmatpush3.bf16.msra.mxu0 %v6509_v29  ;;  %5584 = vmatprep.subr.bf16.mxu1 %v6630_v9  ;;  %v6694_v19 = vpack.c.bf16 %v7533_v41, %v7532_v12  ;;  %v1902_v46 = vand.u32 4294901760, %v6667_v48  ;;  %v3196_v24 = vand.u32 4294901760, %v6679_v47  ;;  %v1890_v12 = vand.u32 4294901760, %v1889_v56 }
  0x67   : > { %5680 = vmatprep.subr.bf16.mxu0 %v6632_v4  ;;  %4863 = vmatmul.mubr.f32.gmra.mrb[2].mxu1 %v6200_v5  ;;  %v6700_v20 = vpack.c.bf16 %v7412_v57, %v7535_v33  ;;  %v1897_v41 = vand.u32 4294901760, %v1896_v35  ;;  %v3177_v33 = vand.u32 4294901760, %v3176_v55  ;;  %v3184_v57 = vand.u32 4294901760, %v3183_v21 }
  0x68   : > { %4983 = vmatmul.mubr.f32.gmra.mrb[2].mxu0 %v6176_v60  ;;  %4865 = vmatprep.mubr.f32.mxu1 %v6203_v6  ;;  %7534 = vst [vmem:[#allocation71_spill] sm:$0xff] %v6694_v19  ;;  %v6712_v10 = vpack.c.bf16 %v1909_v28, %v1902_v46  ;;  %v6714_v17 = vpack.c.bf16 %v3196_v24, %v3189_v34  ;;  %v7539_v6 = vand.u32 4294901760, %v6567_v26  ;;  %v7540_v56 = vand.u32 4294901760, %v6574_v22 }
  0x69   : > { %4985 = vmatprep.mubr.f32.mxu0 %v6178_v61  ;;  %7536 = vst [vmem:[#allocation72_spill] sm:$0xff] %v6700_v20  ;;  %5586 = vmatpush3.bf16.msra.mxu1 %v6630_v9  ;;  %v7541_v55 = vand.u32 4294901760, %v6579_v51 }
  0x6a   : > { %5682 = vmatpush3.bf16.msra.mxu0 %v6632_v4  ;;  %5588 = vmatprep.subr.bf16.mxu1 %v6653_v1  ;;  %7537 = vst [vmem:[#allocation73_spill] sm:$0xff] %v6712_v10  ;;  %7538 = vst [vmem:[#allocation74_spill] sm:$0xff] %v6714_v17  ;;  %v6721_v5 = vsub.f32 %v6567_v26, %v7539_v6  ;;  %v6728_v35 = vsub.f32 %v6574_v22, %v7540_v56  ;;  %v7542_v17 = vand.u32 4294901760, %v6584_v8  ;;  %v6759_v22 = vld [vmem:[%s6431_s10 + $0x68] sm:$0xff] }
  0x6b   : > { %5684 = vmatprep.subr.bf16.mxu0 %v6659_v15  ;;  %4866 = vmatmul.mubr.f32.gmra.mrb[4].mxu1 %v6206_v7  ;;  %v6733_v21 = vsub.f32 %v6579_v51, %v7541_v55  ;;  %v6742_v6 = vpack.c.bf16 %v1897_v41, %v1890_v12  ;;  %v6744_v26 = vpack.c.bf16 %v3184_v57, %v3177_v33  ;;  %v6762_v12 = vld [vmem:[%s6431_s10 + $0x60] sm:$0xff]  ;;  %v7545_v56 = vand.u32 4294901760, %v6616_v53 }
  0x6c   : > { %4986 = vmatmul.mubr.f32.gmra.mrb[4].mxu0 %v6180_v62  ;;  %4868 = vmatprep.mubr.f32.mxu1 %v6248_v43  ;;  %v6738_v10 = vsub.f32 %v6584_v8, %v7542_v17  ;;  %v1916_v8 = vand.u32 4294901760, %v6721_v5  ;;  %v1923_v51 = vand.u32 4294901760, %v6728_v35 }
  0x6d   : > { %4988 = vmatprep.mubr.f32.mxu0 %v6236_v36  ;;  %5590 = vmatpush3.bf16.msra.mxu1 %v6653_v1  ;;  %v3203_v17 = vand.u32 4294901760, %v6733_v21  ;;  %v6775_v55 = vsub.f32 %v6616_v53, %v7545_v56  ;;  %v6795_v53 = vld [vmem:[%s6431_s10 + $0x78] sm:$0xff]  ;;  %v6798_v56 = vld [vmem:[%s6431_s10 + $0x70] sm:$0xff] }
  0x6e   : > { %5686 = vmatpush3.bf16.msra.mxu0 %v6659_v15  ;;  %5592 = vmatprep.subr.bf16.mxu1 %v6694_v19  ;;  %v3210_v57 = vand.u32 4294901760, %v6738_v10  ;;  %v6766_v41 = vpack.c.bf16 %v1923_v51, %v1916_v8  ;;  %v1917_v43 = vsub.f32 %v6721_v5, %v1916_v8  ;;  %v1924_v7 = vsub.f32 %v6728_v35, %v1923_v51  ;;  %v7553_v1 = vld [vmem:[#allocation48_spill] sm:$0xff] }
  0x6f   : > { %5688 = vmatprep.subr.bf16.mxu0 %v6700_v20  ;;  %4869 = vmatmul.mubr.f32.gmra.mrb[6].mxu1 %v6270_v63  ;;  %v6041_v15 = vmov 0  }
  0x70   : > { %4989 = vmatmul.mubr.f32.gmra.mrb[6].mxu0 %v6250_v44  ;;  %4871 = vmatprep.mubr.f32.mxu1 %v6281_v58  ;;  %7543 = vst [vmem:[#allocation75_spill] sm:$0xff] %v6766_v41  ;;  %v6768_v33 = vpack.c.bf16 %v3210_v57, %v3203_v17  ;;  %v7546_v58 = vand.u32 4294901760, %v6621_v14 }
  0x71   : > { %4991 = vmatprep.mubr.f32.mxu0 %v6263_v54  ;;  %5594 = vmatpush3.bf16.msra.mxu1 %v6694_v19 }
  0x72   : > { %5690 = vmatpush3.bf16.msra.mxu0 %v6700_v20  ;;  %5596 = vmatprep.subr.bf16.mxu1 %v6742_v6  ;;  %7544 = vst [vmem:[#allocation76_spill] sm:$0xff] %v6768_v33  ;;  %v6780_v63 = vsub.f32 %v6621_v14, %v7546_v58  ;;  %v7548_v33 = vand.u32 4294901760, %v6637_v11  ;;  %v1903_v58 = vsub.f32 %v6667_v48, %v1902_v46 }
  0x73   : > { %5692 = vmatprep.subr.bf16.mxu0 %v6744_v26  ;;  %4872 = vmatmul.mubr.f32.gmra.mrb[8].mxu1 %v6298_v27  ;;  %v7547_v27 = vand.u32 4294901760, %v6628_v25  ;;  %v3197_v14 = vsub.f32 %v6679_v47, %v3196_v24 }
  0x74   : > { %4992 = vmatmul.mubr.f32.gmra.mrb[8].mxu0 %v6272_v0  ;;  %4874 = vmatprep.mubr.f32.mxu1 %v6325_v16  ;;  %v6790_v16 = vsub.f32 %v6637_v11, %v7548_v33  ;;  %v3190_v11 = vsub.f32 %v6677_v31, %v3189_v34  ;;  %v1937_v33 = vand.u32 4294901760, %v6780_v63  ;;  %v1904_v34 = vand.u32 4294901760, %v1903_v58  ;;  %v7554_v58 = vld [vmem:[#allocation45_spill] sm:$0xff] }
  0x75   : > { %4994 = vmatprep.mubr.f32.mxu0 %v6306_v39  ;;  %v6785_v41 = vsub.f32 %v6628_v25, %v7547_v27  ;;  %1534 = vperm.xlu1 %6024, %v6759_v22   ;;  %v1910_v27 = vsub.f32 %v6669_v38, %v1909_v28  ;;  %v1930_v25 = vand.u32 4294901760, %v6775_v55  ;;  %v3198_v19 = vand.u32 4294901760, %v3197_v14 }
  0x76   : > { %1529 = vperm.xlu0 %6023, %v6762_v12   ;;  %v3224_v20 = vand.u32 4294901760, %v6790_v16 }
  0x77   : > { %4875 = vmatmul.mubr.f32.gmra.mrb[10].mxu1 %v6331_v3  ;;  %v3217_v3 = vand.u32 4294901760, %v6785_v41  ;;  %v6816_v46 = vpack.c.bf16 %v1937_v33, %v1930_v25  ;;  %v1911_v24 = vand.u32 4294901760, %v1910_v27  ;;  %v7555_v27 = vld [vmem:[#allocation16_spill] sm:$0xff] }
  0x78   : > { %4995 = vmatmul.mubr.f32.gmra.mrb[10].mxu0 %v6318_v49  ;;  %4877 = vmatprep.mubr.f32.mxu1 %v6353_v45  ;;  %v3191_v45 = vand.u32 4294901760, %v3190_v11  ;;  %v1918_v11 = vand.u32 4294901760, %v1917_v43 }
  0x79   : > { %4997 = vmatprep.mubr.f32.mxu0 %v6333_v2  ;;  %1544 = vperm.xlu1 %6024, %v6795_v53   ;;  %7549 = vst [vmem:[#allocation77_spill] sm:$0xff] %v6816_v46  ;;  %v6818_v28 = vpack.c.bf16 %v3224_v20, %v3217_v3  ;;  %v3211_v46 = vsub.f32 %v6738_v10, %v3210_v57 }
  0x7a   : > { %1539 = vperm.xlu0 %6023, %v6798_v56   ;;  %v5599_v8 = vpack.c.bf16 %v1911_v24, %v1904_v34  ;;  %v5695_v51 = vpack.c.bf16 %v3198_v19, %v3191_v45  ;;  %v1938_v57 = vsub.f32 %v6780_v63, %v1937_v33  ;;  %v3218_v9 = vsub.f32 %v6785_v41, %v3217_v3  ;;  %v7561_v33 = vld [vmem:[#allocation21_spill] sm:$0xff]  ;;  %v7565_v34 = vld [vmem:[#allocation35_spill] sm:$0xff]  ;;  %v7566_v24 = vld [vmem:[#allocation38_spill] sm:$0xff] }
  0x7b   : > { %4878 = vmatmul.mubr.f32.gmra.mrb[12].mxu1 %v6368_v37  ;;  %7550 = vst [vmem:[#allocation78_spill] sm:$0xff] %v6818_v28  ;;  %v3204_v37 = vsub.f32 %v6733_v21, %v3203_v17  ;;  %v7551_v28 = vld [vmem:[#allocation56_spill] sm:$0xff]  ;;  %v1931_v17 = vsub.f32 %v6775_v55, %v1930_v25  ;;  %v3212_v4 = vand.u32 4294901760, %v3211_v46  ;;  %v7562_v46 = vld [vmem:[#allocation22_spill] sm:$0xff] }
  0x7c   : > { %4998 = vmatmul.mubr.f32.gmra.mrb[12].mxu0 %v6355_v23  ;;  %4880 = vmatprep.mubr.f32.mxu1 %v6388_v13  ;;  %v7552_v13 = vld [vmem:[#allocation54_spill] sm:$0xff]  ;;  %v3219_v19 = vand.u32 4294901760, %v3218_v9  ;;  %v7560_v25 = vld [vmem:[#allocation20_spill] sm:$0xff]  ;;  %v5707_v9 = vpack.c.bf16 %v6599_v32, %v6596_v40  ;;  %v7568_v40 = vld [vmem:[#allocation57_spill] sm:$0xff] }
  0x7d   : > { %5000 = vmatprep.mubr.f32.mxu0 %v6370_v52  ;;  %6026 = vset.pattern.permute.xlu1 %v6041_v15  ;;  %v3205_v14 = vand.u32 4294901760, %v3204_v37  ;;  %v1932_v3 = vand.u32 4294901760, %v1931_v17  ;;  %v1939_v37 = vand.u32 4294901760, %v1938_v57  ;;  %v7570_v32 = vld [vmem:[#allocation46_spill] sm:$0xff]  ;;  %v7576_v17 = vld [vmem:[#allocation61_spill] sm:$0xff] }
  0x7e   : > { %6025 = vset.pattern.permute.xlu0 %v6041_v15  ;;  %1568 = vperm.xlu1 %6026, %v7551_v28   ;;  %v1925_v15 = vand.u32 4294901760, %v1924_v7  ;;  %v7558_v28 = vld [vmem:[#allocation17_spill] sm:$0xff]  ;;  %v7559_v7 = vld [vmem:[#allocation18_spill] sm:$0xff] }
  0x7f   : > { %1564 = vperm.xlu0 %6025, %v7552_v13   ;;  %4881 = vmatmul.mubr.f32.gmra.mrb[14].mxu1 %v7553_v1  ;;  %v3225_v1 = vsub.f32 %v6790_v16, %v3224_v20  ;;  %v5699_v45 = vpack.c.bf16 %v3212_v4, %v3205_v14  ;;  %v7563_v4 = vld [vmem:[#allocation29_spill] sm:$0xff]  ;;  %v7577_v57 = vld [vmem:[#allocation62_spill] sm:$0xff]  ;;  %v7578_v14 = vld [vmem:[#allocation52_spill] sm:$0xff] }
  0x80   : > { %5001 = vmatmul.mubr.f32.gmra.mrb[14].mxu0 %v7554_v58  ;;  %5019 = vmatprep.mubr.f32.mxu1 %v7555_v27  ;;  %v7557_v58 = vld [vmem:[#allocation53_spill] sm:$0xff]  ;;  %v5603_v43 = vpack.c.bf16 %v1925_v15, %v1918_v11  ;;  %v7574_v11 = vld [vmem:[#allocation50_spill] sm:$0xff]  ;;  %v7575_v15 = vld [vmem:[#allocation51_spill] sm:$0xff] }
  0x81   : > { %5259 = vmatprep.mubr.f32.mxu0 %v7555_v27  ;;  %v3226_v20 = vand.u32 4294901760, %v3225_v1  ;;  %v5611_v1 = vpack.c.bf16 %v6591_v42, %v6588_v30  ;;  %v7567_v42 = vld [vmem:[#allocation41_spill] sm:$0xff]  ;;  %v7569_v30 = vld [vmem:[#allocation58_spill] sm:$0xff]  ;;  %v7571_v27 = vld [vmem:[#allocation47_spill] sm:$0xff] }
  0x82   : > { %1572 = vperm.xlu1 %6026, %v7557_v58  }
  0x83   : > { %1576 = vperm.xlu0 %6025, %v7556_v59   ;;  %5020 = vmatmul.mubr.f32.vlgmr.msra.gmra.mrb[16].mxu1 %v7558_v28 }
  0x84   : > { %5260 = vmatmul.mubr.f32.vlgmr.msra.gmra.mrb[16].mxu0 %v7558_v28  ;;  %5598 = vmatpush3.bf16.msra.mxu1 %v6742_v6  ;;  %v5607_v6 = vpack.c.bf16 %v1939_v37, %v1932_v3  ;;  %v7564_v28 = vld [vmem:[#allocation33_spill] sm:$0xff]  ;;  %v7581_v3 = vld [vmem:[#allocation64_spill] sm:$0xff]  ;;  %v5711_v37 = vpack.c.bf16 %v6679_v47, %v6677_v31  ;;  %v5623_v47 = vpack.c.bf16 %v6780_v63, %v6775_v55  ;;  %v7590_v55 = vld [vmem:[#allocation10_spill] sm:$0xff] }
  0x85   : > { %5022 = vmatprep.mubr.f32.mxu1 %v7559_v7  ;;  %5262 = vmatprep.mubr.f32.mxu0 %v7559_v7  ;;  %v7579_v7 = vld [vmem:[#allocation2_spill] sm:$0xff]  ;;  %v7583_v63 = vld [vmem:[#allocation56_spill] sm:$0xff]  ;;  %v7586_v31 = vld [vmem:[#allocation5_spill] sm:$0xff] }
  0x86   : > { %5694 = vmatpush3.bf16.msra.mxu0 %v6744_v26  ;;  %5600 = vmatprep.subr.bf16.mxu1 %v5599_v8  ;;  %v5703_v26 = vpack.c.bf16 %v3226_v20, %v3219_v19  ;;  %v7582_v19 = vld [vmem:[#allocation3_spill] sm:$0xff]  ;;  %v5619_v20 = vpack.c.bf16 %v6728_v35, %v6721_v5  ;;  %v5719_v5 = vpack.c.bf16 %v6790_v16, %v6785_v41  ;;  %v6042_v16 = vmov 2   ;;  %v7587_v35 = vld [vmem:[#allocation6_spill] sm:$0xff] }
  0x87   : > { %5696 = vmatprep.subr.bf16.mxu0 %v5695_v51  ;;  %5023 = vmatmul.mubr.f32.gmra.mrb[18].mxu1 %v7560_v25  ;;  %v7589_v41 = vld [vmem:[#allocation66_spill] sm:$0xff] }
  0x88   : > { %5263 = vmatmul.mubr.f32.gmra.mrb[18].mxu0 %v7560_v25  ;;  %5025 = vmatprep.mubr.f32.mxu1 %v7561_v33  ;;  %v7592_v25 = vld [vmem:[#allocation67_spill] sm:$0xff] }
  0x89   : > { %5265 = vmatprep.mubr.f32.mxu0 %v7561_v33  ;;  %5602 = vmatpush3.bf16.msra.mxu1 %v5599_v8  ;;  %v7572_v8 = vld [vmem:[#allocation59_spill] sm:$0xff]  ;;  %v7593_v33 = vld [vmem:[#allocation68_spill] sm:$0xff] }
  0x8a   : > { %5698 = vmatpush3.bf16.msra.mxu0 %v5695_v51  ;;  %5604 = vmatprep.subr.bf16.mxu1 %v5603_v43  ;;  %v7573_v51 = vld [vmem:[#allocation60_spill] sm:$0xff] }
  0x8b   : > { %5700 = vmatprep.subr.bf16.mxu0 %v5699_v45  ;;  %5026 = vmatmul.mubr.f32.gmra.mrb[20].mxu1 %v7562_v46 }
  0x8c   : > { %5266 = vmatmul.mubr.f32.gmra.mrb[20].mxu0 %v7562_v46  ;;  %5028 = vmatprep.mubr.f32.mxu1 %v7563_v4  ;;  %v7596_v46 = vld [vmem:[#allocation71_spill] sm:$0xff] }
  0x8d   : > { %5268 = vmatprep.mubr.f32.mxu0 %v7563_v4  ;;  %5606 = vmatpush3.bf16.msra.mxu1 %v5603_v43  ;;  %v7580_v43 = vld [vmem:[#allocation63_spill] sm:$0xff]  ;;  %v7597_v4 = vld [vmem:[#allocation72_spill] sm:$0xff] }
  0x8e   : > { %5702 = vmatpush3.bf16.msra.mxu0 %v5699_v45  ;;  %5608 = vmatprep.subr.bf16.mxu1 %v5607_v6  ;;  %v5615_v45 = vpack.c.bf16 %v6669_v38, %v6667_v48  ;;  %v5715_v48 = vpack.c.bf16 %v6738_v10, %v6733_v21  ;;  %v7584_v38 = vld [vmem:[#allocation45_spill] sm:$0xff]  ;;  %v7585_v10 = vld [vmem:[#allocation4_spill] sm:$0xff] }
  0x8f   : > { %5704 = vmatprep.subr.bf16.mxu0 %v5703_v26  ;;  %5029 = vmatmul.mubr.f32.gmra.mrb[22].mxu1 %v7564_v28  ;;  %v7588_v21 = vld [vmem:[#allocation65_spill] sm:$0xff] }
  0x90   : > { %5269 = vmatmul.mubr.f32.gmra.mrb[22].mxu0 %v7564_v28  ;;  %5031 = vmatprep.mubr.f32.mxu1 %v7565_v34  ;;  %v7600_v28 = vld [vmem:[#allocation69_spill] sm:$0xff] }
  0x91   : > { %5271 = vmatprep.mubr.f32.mxu0 %v7565_v34  ;;  %5610 = vmatpush3.bf16.msra.mxu1 %v5607_v6  ;;  %v7594_v6 = vld [vmem:[#allocation12_spill] sm:$0xff]  ;;  %v7601_v34 = vld [vmem:[#allocation70_spill] sm:$0xff] }
  0x92   : > { %5706 = vmatpush3.bf16.msra.mxu0 %v5703_v26  ;;  %5612 = vmatprep.subr.bf16.mxu1 %v5611_v1  ;;  %v7595_v26 = vld [vmem:[#allocation19_spill] sm:$0xff] }
  0x93   : > { %5708 = vmatprep.subr.bf16.mxu0 %v5707_v9  ;;  %5032 = vmatmul.mubr.f32.gmra.mrb[24].mxu1 %v7566_v24 }
  0x94   : > { %5272 = vmatmul.mubr.f32.gmra.mrb[24].mxu0 %v7566_v24  ;;  %5034 = vmatprep.mubr.f32.mxu1 %v7567_v42  ;;  %v7602_v24 = vld [vmem:[#allocation27_spill] sm:$0xff] }
  0x95   : > { %5274 = vmatprep.mubr.f32.mxu0 %v7567_v42  ;;  %1584 = vperm.xlu0 %6025, %v7568_v40   ;;  %v7603_v42 = vld [vmem:[#allocation31_spill] sm:$0xff] }
  0x96   : > { %1580 = vperm.xlu1 %6026, %v7569_v30  }
  0x97   : > { %5035 = vmatmul.mubr.f32.gmra.mrb[26].mxu1 %v7570_v32 }
  0x98   : > { %5275 = vmatmul.mubr.f32.gmra.mrb[26].mxu0 %v7570_v32  ;;  %5037 = vmatprep.mubr.f32.mxu1 %v7571_v27  ;;  %v7604_v32 = vld [vmem:[#allocation32_spill] sm:$0xff] }
  0x99   : > { %5277 = vmatprep.mubr.f32.mxu0 %v7571_v27  ;;  %1592 = vperm.xlu0 %6025, %v7572_v8   ;;  %v7605_v27 = vld [vmem:[#allocation37_spill] sm:$0xff] }
  0x9a   : > { %1588 = vperm.xlu1 %6026, %v7573_v51  }
  0x9b   : > { %5038 = vmatmul.mubr.f32.gmra.mrb[28].mxu1 %v7574_v11 }
  0x9c   : > { %5278 = vmatmul.mubr.f32.gmra.mrb[28].mxu0 %v7574_v11  ;;  %5040 = vmatprep.mubr.f32.mxu1 %v7575_v15  ;;  %v7606_v11 = vld [vmem:[#allocation40_spill] sm:$0xff] }
  0x9d   : > { %5280 = vmatprep.mubr.f32.mxu0 %v7575_v15  ;;  %1600 = vperm.xlu0 %6025, %v7576_v17   ;;  %v7607_v15 = vld [vmem:[#allocation43_spill] sm:$0xff] }
  0x9e   : > { %1596 = vperm.xlu1 %6026, %v7577_v57  }
  0x9f   : > { %5041 = vmatmul.mubr.f32.gmra.mrb[30].mxu1 %v7578_v14 }
  0xa0   : > { %5281 = vmatmul.mubr.f32.gmra.mrb[30].mxu0 %v7578_v14  ;;  %5059 = vmatprep.mubr.f32.mxu1 %v7579_v7  ;;  %v7608_v14 = vld [vmem:[#allocation48_spill] sm:$0xff] }
  0xa1   : > { %5299 = vmatprep.mubr.f32.mxu0 %v7579_v7  ;;  %1608 = vperm.xlu0 %6025, %v7580_v43  }
  0xa2   : > { %1604 = vperm.xlu1 %6026, %v7581_v3  }
  0xa3   : > { %5060 = vmatmul.mubr.f32.vlgmr.msra.gmra.mrb[16].mxu1 %v7582_v19 }
  0xa4   : > { %5300 = vmatmul.mubr.f32.vlgmr.msra.gmra.mrb[16].mxu0 %v7582_v19  ;;  %5614 = vmatpush3.bf16.msra.mxu1 %v5611_v1  ;;  %v7598_v1 = vld [vmem:[#allocation24_spill] sm:$0xff] }
  0xa5   : > { %5062 = vmatprep.mubr.f32.mxu1 %v6159_v50  ;;  %5302 = vmatprep.mubr.f32.mxu0 %v6159_v50 }
  0xa6   : > { %5710 = vmatpush3.bf16.msra.mxu0 %v5707_v9  ;;  %5616 = vmatprep.subr.bf16.mxu1 %v5615_v45  ;;  %v7599_v9 = vld [vmem:[#allocation25_spill] sm:$0xff] }
  0xa7   : > { %5712 = vmatprep.subr.bf16.mxu0 %v5711_v37  ;;  %5063 = vmatmul.mubr.f32.gmra.mrb[18].mxu1 %v6176_v60 }
  0xa8   : > { %5303 = vmatmul.mubr.f32.gmra.mrb[18].mxu0 %v6176_v60  ;;  %5065 = vmatprep.mubr.f32.mxu1 %v6178_v61 }
  0xa9   : > { %5305 = vmatprep.mubr.f32.mxu0 %v6178_v61  ;;  %5618 = vmatpush3.bf16.msra.mxu1 %v5615_v45  ;;  %v7609_v45 = vld [vmem:[#allocation7_spill] sm:$0xff] }
  0xaa   : > { %5714 = vmatpush3.bf16.msra.mxu0 %v5711_v37  ;;  %5620 = vmatprep.subr.bf16.mxu1 %v5619_v20  ;;  %v7610_v37 = vld [vmem:[#allocation8_spill] sm:$0xff] }
  0xab   : > { %5716 = vmatprep.subr.bf16.mxu0 %v5715_v48  ;;  %5066 = vmatmul.mubr.f32.gmra.mrb[20].mxu1 %v6180_v62 }
  0xac   : > { %5306 = vmatmul.mubr.f32.gmra.mrb[20].mxu0 %v6180_v62  ;;  %5068 = vmatprep.mubr.f32.mxu1 %v6236_v36 }
  0xad   : > { %5308 = vmatprep.mubr.f32.mxu0 %v6236_v36  ;;  %5622 = vmatpush3.bf16.msra.mxu1 %v5619_v20  ;;  %v7611_v20 = vld [vmem:[#allocation9_spill] sm:$0xff] }
  0xae   : > { %5718 = vmatpush3.bf16.msra.mxu0 %v5715_v48  ;;  %5624 = vmatprep.subr.bf16.mxu1 %v5623_v47  ;;  %v7612_v48 = vld [vmem:[#allocation73_spill] sm:$0xff] }
  0xaf   : > { %5720 = vmatprep.subr.bf16.mxu0 %v5719_v5  ;;  %5069 = vmatmul.mubr.f32.gmra.mrb[22].mxu1 %v6250_v44 }
  0xb0   : > { %5309 = vmatmul.mubr.f32.gmra.mrb[22].mxu0 %v6250_v44  ;;  %5071 = vmatprep.mubr.f32.mxu1 %v6263_v54 }
  0xb1   : > { %5311 = vmatprep.mubr.f32.mxu0 %v6263_v54  ;;  %5626 = vmatpush3.bf16.msra.mxu1 %v5623_v47  ;;  %v7613_v47 = vld [vmem:[#allocation74_spill] sm:$0xff] }
  0xb2   : > { %5722 = vmatpush3.bf16.msra.mxu0 %v5719_v5  ;;  %5628 = vmatprep.subr.bf16.mxu1 %v6507_v18  ;;  %v7614_v5 = vld [vmem:[#allocation13_spill] sm:$0xff] }
  0xb3   : > { %5724 = vmatprep.subr.bf16.mxu0 %v6509_v29  ;;  %5072 = vmatmul.mubr.f32.gmra.mrb[24].mxu1 %v6272_v0 }
  0xb4   : > { %5312 = vmatmul.mubr.f32.gmra.mrb[24].mxu0 %v6272_v0  ;;  %5074 = vmatprep.mubr.f32.mxu1 %v6306_v39 }
  0xb5   : > { %5314 = vmatprep.mubr.f32.mxu0 %v6306_v39  ;;  %1616 = vperm.xlu0 %6025, %v6759_v22  }
  0xb6   : > { %1612 = vperm.xlu1 %6026, %v6762_v12  }
  0xb7   : > { %5075 = vmatmul.mubr.f32.gmra.mrb[26].mxu1 %v6318_v49 }
  0xb8   : > { %5315 = vmatmul.mubr.f32.gmra.mrb[26].mxu0 %v6318_v49  ;;  %5077 = vmatprep.mubr.f32.mxu1 %v6333_v2 }
  0xb9   : > { %5317 = vmatprep.mubr.f32.mxu0 %v6333_v2  ;;  %1624 = vperm.xlu0 %6025, %v6795_v53  }
  0xba   : > { %1620 = vperm.xlu1 %6026, %v6798_v56  }
  0xbb   : > { %5078 = vmatmul.mubr.f32.gmra.mrb[28].mxu1 %v6355_v23 }
  0xbc   : > { %5318 = vmatmul.mubr.f32.gmra.mrb[28].mxu0 %v6355_v23  ;;  %5080 = vmatprep.mubr.f32.mxu1 %v6370_v52 }
  0xbd   : > { %5320 = vmatprep.mubr.f32.mxu0 %v6370_v52  ;;  %6028 = vset.pattern.permute.xlu0 %v6042_v16 }
  0xbe   : > { %6027 = vset.pattern.permute.xlu1 %v6042_v16  ;;  %2839 = vperm.xlu0 %6028, %v7583_v63   ;;  %v7615_v16 = vld [vmem:[#allocation14_spill] sm:$0xff] }
  0xbf   : > { %2835 = vperm.xlu1 %6027, %v7552_v13   ;;  %5081 = vmatmul.mubr.f32.gmra.mrb[30].mxu1 %v7584_v38 }
  0xc0   : > { %5321 = vmatmul.mubr.f32.gmra.mrb[30].mxu0 %v7584_v38  ;;  %5099 = vmatprep.mubr.f32.mxu1 %v7585_v10 }
  0xc1   : > { %5339 = vmatprep.mubr.f32.mxu0 %v7585_v10  ;;  %v7616_v10 = vld [vmem:[#allocation75_spill] sm:$0xff] }
  0xc2   : > { %2851 = vperm.xlu0 %6028, %v7569_v30  }
  0xc3   : > { %2843 = vperm.xlu1 %6027, %v7557_v58   ;;  %5100 = vmatmul.mubr.f32.vlgmr.msra.gmra.mrb[16].mxu1 %v7586_v31  ;;  %v7591_v58 = vld [vmem:[#allocation11_spill] sm:$0xff] }
  0xc4   : > { %5340 = vmatmul.mubr.f32.vlgmr.msra.gmra.mrb[16].mxu0 %v7586_v31  ;;  %5630 = vmatpush3.bf16.msra.mxu1 %v6507_v18  ;;  %v7617_v31 = vld [vmem:[#allocation76_spill] sm:$0xff] }
  0xc5   : > { %5102 = vmatprep.mubr.f32.mxu1 %v7587_v35  ;;  %5342 = vmatprep.mubr.f32.mxu0 %v7587_v35  ;;  %v7618_v35 = vld [vmem:[#allocation15_spill] sm:$0xff] }
  0xc6   : > { %5726 = vmatpush3.bf16.msra.mxu0 %v6509_v29  ;;  %5632 = vmatprep.subr.bf16.mxu1 %v7588_v21 }
  0xc7   : > { %5728 = vmatprep.subr.bf16.mxu0 %v7589_v41  ;;  %5103 = vmatmul.mubr.f32.gmra.mrb[18].mxu1 %v7590_v55 }
  0xc8   : > { %5343 = vmatmul.mubr.f32.gmra.mrb[18].mxu0 %v7590_v55  ;;  %5105 = vmatprep.mubr.f32.mxu1 %v7591_v58  ;;  %v7619_v55 = vld [vmem:[#allocation23_spill] sm:$0xff] }
  0xc9   : > { %5345 = vmatprep.mubr.f32.mxu0 %v7591_v58  ;;  %5634 = vmatpush3.bf16.msra.mxu1 %v7588_v21  ;;  %v7620_v58 = vld [vmem:[#allocation77_spill] sm:$0xff] }
  0xca   : > { %5730 = vmatpush3.bf16.msra.mxu0 %v7589_v41  ;;  %5636 = vmatprep.subr.bf16.mxu1 %v7592_v25 }
  0xcb   : > { %5732 = vmatprep.subr.bf16.mxu0 %v7593_v33  ;;  %5106 = vmatmul.mubr.f32.gmra.mrb[20].mxu1 %v7594_v6 }
  0xcc   : > { %5346 = vmatmul.mubr.f32.gmra.mrb[20].mxu0 %v7594_v6  ;;  %5108 = vmatprep.mubr.f32.mxu1 %v7595_v26  ;;  %v7621_v6 = vld [vmem:[#allocation78_spill] sm:$0xff] }
  0xcd   : > { %5348 = vmatprep.mubr.f32.mxu0 %v7595_v26  ;;  %5638 = vmatpush3.bf16.msra.mxu1 %v7592_v25  ;;  %v7622_v26 = vld [vmem:[#allocation26_spill] sm:$0xff] }
  0xce   : > { %5734 = vmatpush3.bf16.msra.mxu0 %v7593_v33  ;;  %5640 = vmatprep.subr.bf16.mxu1 %v7596_v46 }
  0xcf   : > { %5736 = vmatprep.subr.bf16.mxu0 %v7597_v4  ;;  %5109 = vmatmul.mubr.f32.gmra.mrb[22].mxu1 %v7598_v1 }
  0xd0   : > { %5349 = vmatmul.mubr.f32.gmra.mrb[22].mxu0 %v7598_v1  ;;  %5111 = vmatprep.mubr.f32.mxu1 %v7599_v9  ;;  %v7623_v1 = vld [vmem:[#allocation28_spill] sm:$0xff] }
  0xd1   : > { %5351 = vmatprep.mubr.f32.mxu0 %v7599_v9  ;;  %5642 = vmatpush3.bf16.msra.mxu1 %v7596_v46  ;;  %v7624_v9 = vld [vmem:[#allocation30_spill] sm:$0xff] }
  0xd2   : > { %5738 = vmatpush3.bf16.msra.mxu0 %v7597_v4  ;;  %5644 = vmatprep.subr.bf16.mxu1 %v7600_v28 }
  0xd3   : > { %5740 = vmatprep.subr.bf16.mxu0 %v7601_v34  ;;  %5112 = vmatmul.mubr.f32.gmra.mrb[24].mxu1 %v7602_v24 }
  0xd4   : > { %5352 = vmatmul.mubr.f32.gmra.mrb[24].mxu0 %v7602_v24  ;;  %5114 = vmatprep.mubr.f32.mxu1 %v7603_v42  ;;  %v7626_v24 = vld [vmem:[#allocation36_spill] sm:$0xff] }
  0xd5   : > { %5354 = vmatprep.mubr.f32.mxu0 %v7603_v42  ;;  %2847 = vperm.xlu1 %6027, %v7556_v59   ;;  %v7627_v42 = vld [vmem:[#allocation39_spill] sm:$0xff] }
  0xd6   : > { %2859 = vperm.xlu0 %6028, %v7573_v51  }
  0xd7   : > { %5115 = vmatmul.mubr.f32.gmra.mrb[26].mxu1 %v7604_v32 }
  0xd8   : > { %5355 = vmatmul.mubr.f32.gmra.mrb[26].mxu0 %v7604_v32  ;;  %5117 = vmatprep.mubr.f32.mxu1 %v7605_v27 }
  0xd9   : > { %5357 = vmatprep.mubr.f32.mxu0 %v7605_v27  ;;  %2855 = vperm.xlu1 %6027, %v7568_v40   ;;  %v6043_v27 = vmov 3  }
  0xda   : > { %2867 = vperm.xlu0 %6028, %v7577_v57  }
  0xdb   : > { %5118 = vmatmul.mubr.f32.gmra.mrb[28].mxu1 %v7606_v11 }
  0xdc   : > { %5358 = vmatmul.mubr.f32.gmra.mrb[28].mxu0 %v7606_v11  ;;  %5120 = vmatprep.mubr.f32.mxu1 %v7607_v15  ;;  %v7628_v11 = vld [vmem:[#allocation42_spill] sm:$0xff] }
  0xdd   : > { %5360 = vmatprep.mubr.f32.mxu0 %v7607_v15  ;;  %2863 = vperm.xlu1 %6027, %v7572_v8   ;;  %v7629_v15 = vld [vmem:[#allocation44_spill] sm:$0xff] }
  0xde   : > { %2875 = vperm.xlu0 %6028, %v7581_v3  }
  0xdf   : > { %5121 = vmatmul.mubr.f32.gmra.mrb[30].mxu1 %v7608_v14 }
  0xe0   : > { %5361 = vmatmul.mubr.f32.gmra.mrb[30].mxu0 %v7608_v14  ;;  %5139 = vmatprep.mubr.f32.mxu1 %v7609_v45  ;;  %v7630_v14 = vld [vmem:[#allocation49_spill] sm:$0xff] }
  0xe1   : > { %5379 = vmatprep.mubr.f32.mxu0 %v7609_v45  ;;  %2871 = vperm.xlu1 %6027, %v7576_v17  }
  0xe2   : > { %2883 = vperm.xlu0 %6028, %v6762_v12  }
  0xe3   : > { %5140 = vmatmul.mubr.f32.vlgmr.msra.gmra.mrb[16].mxu1 %v7610_v37 }
  0xe4   : > { %5380 = vmatmul.mubr.f32.vlgmr.msra.gmra.mrb[16].mxu0 %v7610_v37  ;;  %5646 = vmatpush3.bf16.msra.mxu1 %v7600_v28  ;;  %v7028_v28 = vpop.permute.xlu1 %1479 }
  0xe5   : > { %5142 = vmatprep.mubr.f32.mxu1 %v7611_v20  ;;  %5382 = vmatprep.mubr.f32.mxu0 %v7611_v20 }
  0xe6   : > { %5742 = vmatpush3.bf16.msra.mxu0 %v7601_v34  ;;  %5648 = vmatprep.subr.bf16.mxu1 %v7612_v48  ;;  %v7625_v34 = vld [vmem:[#allocation34_spill] sm:$0xff] }
  0xe7   : > { %5744 = vmatprep.subr.bf16.mxu0 %v7613_v47  ;;  %5143 = vmatmul.mubr.f32.gmra.mrb[18].mxu1 %v7614_v5 }
  0xe8   : > { %5383 = vmatmul.mubr.f32.gmra.mrb[18].mxu0 %v7614_v5  ;;  %5145 = vmatprep.mubr.f32.mxu1 %v7615_v16  ;;  %v7038_v32 = vpop.permute.xlu1 %1484 }
  0xe9   : > { %5385 = vmatprep.mubr.f32.mxu0 %v7615_v16  ;;  %5650 = vmatpush3.bf16.msra.mxu1 %v7612_v48 }
  0xea   : > { %5746 = vmatpush3.bf16.msra.mxu0 %v7613_v47  ;;  %5652 = vmatprep.subr.bf16.mxu1 %v7616_v10 }
  0xeb   : > { %5748 = vmatprep.subr.bf16.mxu0 %v7617_v31  ;;  %5146 = vmatmul.mubr.f32.gmra.mrb[20].mxu1 %v7618_v35 }
  0xec   : > { %5386 = vmatmul.mubr.f32.gmra.mrb[20].mxu0 %v7618_v35  ;;  %5148 = vmatprep.mubr.f32.mxu1 %v7619_v55  ;;  %v7050_v45 = vpop.permute.xlu1 %1494 }
  0xed   : > { %5388 = vmatprep.mubr.f32.mxu0 %v7619_v55  ;;  %5654 = vmatpush3.bf16.msra.mxu1 %v7616_v10 }
  0xee   : > { %5750 = vmatpush3.bf16.msra.mxu0 %v7617_v31  ;;  %5656 = vmatprep.subr.bf16.mxu1 %v7620_v58 }
  0xef   : > { %5752 = vmatprep.subr.bf16.mxu0 %v7621_v6  ;;  %5149 = vmatmul.mubr.f32.gmra.mrb[22].mxu1 %v7622_v26 }
  0xf0   : > { %5389 = vmatmul.mubr.f32.gmra.mrb[22].mxu0 %v7622_v26  ;;  %5151 = vmatprep.mubr.f32.mxu1 %v7623_v1 }
  0xf1   : > { %5391 = vmatprep.mubr.f32.mxu0 %v7623_v1  ;;  %5658 = vmatpush3.bf16.msra.mxu1 %v7620_v58 }
  0xf2   : > { %5754 = vmatpush3.bf16.msra.mxu0 %v7621_v6  ;;  %5660 = vmatprep.subr.bf16.mxu1 %v6507_v18 }
  0xf3   : > { %5756 = vmatprep.subr.bf16.mxu0 %v6509_v29  ;;  %5152 = vmatmul.mubr.f32.gmra.mrb[24].mxu1 %v7624_v9 }
  0xf4   : > { %5392 = vmatmul.mubr.f32.gmra.mrb[24].mxu0 %v7624_v9  ;;  %5154 = vmatprep.mubr.f32.mxu1 %v7625_v34 }
  0xf5   : > { %5394 = vmatprep.mubr.f32.mxu0 %v7625_v34  ;;  %2879 = vperm.xlu1 %6027, %v7580_v43  }
  0xf6   : > { %2891 = vperm.xlu0 %6028, %v6798_v56  }
  0xf7   : > { %5155 = vmatmul.mubr.f32.gmra.mrb[26].mxu1 %v7626_v24 }
  0xf8   : > { %5395 = vmatmul.mubr.f32.gmra.mrb[26].mxu0 %v7626_v24  ;;  %5157 = vmatprep.mubr.f32.mxu1 %v7627_v42 }
  0xf9   : > { %5397 = vmatprep.mubr.f32.mxu0 %v7627_v42  ;;  %2887 = vperm.xlu1 %6027, %v6759_v22  }
  0xfa   : > { %6029 = vset.pattern.permute.xlu0 %v6043_v27 }
  0xfb   : > { %4122 = vperm.xlu0 %6029, %v7552_v13   ;;  %5158 = vmatmul.mubr.f32.gmra.mrb[28].mxu1 %v7628_v11 }
  0xfc   : > { %5398 = vmatmul.mubr.f32.gmra.mrb[28].mxu0 %v7628_v11  ;;  %5160 = vmatprep.mubr.f32.mxu1 %v7629_v15 }
  0xfd   : > { %5400 = vmatprep.mubr.f32.mxu0 %v7629_v15  ;;  %2895 = vperm.xlu1 %6027, %v6795_v53  }
  0xff   : > { %4134 = vperm.xlu0 %6029, %v7556_v59   ;;  %5161 = vmatmul.mubr.f32.gmra.mrb[30].mxu1 %v7630_v14  ;;  %v7062_v59 = vpop.permute.xlu1 %1504 }
 0x100   : > { %5401 = vmatmul.mubr.f32.gmra.mrb[30].mxu0 %v7630_v14  ;;  %5179 = vmatprep.mubr.f32.mxu1 %v7579_v7 }
 0x101   : > { %5419 = vmatprep.mubr.f32.mxu0 %v7579_v7  ;;  %6030 = vset.pattern.permute.xlu1 %v6043_v27 }
 0x102   : > { %4126 = vperm.xlu1 %6030, %v7583_v63  }
 0x103   : > { %4142 = vperm.xlu0 %6029, %v7568_v40   ;;  %5180 = vmatmul.mubr.f32.vlgmr.msra.gmra.mrb[16].mxu1 %v7582_v19  ;;  %v7076_v13 = vpop.permute.xlu1 %1514 }
 0x104   : > { %5420 = vmatmul.mubr.f32.vlgmr.msra.gmra.mrb[16].mxu0 %v7582_v19  ;;  %5662 = vmatpush3.bf16.msra.mxu1 %v6507_v18 }
 0x105   : > { %5182 = vmatprep.mubr.f32.mxu1 %v6159_v50  ;;  %5422 = vmatprep.mubr.f32.mxu0 %v6159_v50 }
 0x106   : > { %5758 = vmatpush3.bf16.msra.mxu0 %v6509_v29  ;;  %5664 = vmatprep.subr.bf16.mxu1 %v7588_v21  ;;  %v6031_v29 = vld [vmem:[%s6431_s10 + $0x10] sm:$0xff] }
 0x107   : > { %5760 = vmatprep.subr.bf16.mxu0 %v7589_v41  ;;  %5183 = vmatmul.mubr.f32.gmra.mrb[18].mxu1 %v6176_v60  ;;  %v7090_v18 = vpop.permute.xlu1 %1524 }
 0x108   : > { %5423 = vmatmul.mubr.f32.gmra.mrb[18].mxu0 %v6176_v60  ;;  %5185 = vmatprep.mubr.f32.mxu1 %v6178_v61 }
 0x109   : > { %5425 = vmatprep.mubr.f32.mxu0 %v6178_v61  ;;  %5666 = vmatpush3.bf16.msra.mxu1 %v7588_v21 }
 0x10a   : > { %5762 = vmatpush3.bf16.msra.mxu0 %v7589_v41  ;;  %5668 = vmatprep.subr.bf16.mxu1 %v7592_v25 }
 0x10b   : > { %5764 = vmatprep.subr.bf16.mxu0 %v7593_v33  ;;  %5186 = vmatmul.mubr.f32.gmra.mrb[20].mxu1 %v6180_v62  ;;  %v7102_v40 = vpop.permute.xlu1 %1534 }
 0x10c   : > { %5426 = vmatmul.mubr.f32.gmra.mrb[20].mxu0 %v6180_v62  ;;  %5188 = vmatprep.mubr.f32.mxu1 %v6236_v36 }
 0x10d   : > { %5428 = vmatprep.mubr.f32.mxu0 %v6236_v36  ;;  %5670 = vmatpush3.bf16.msra.mxu1 %v7592_v25 }
 0x10e   : > { %5766 = vmatpush3.bf16.msra.mxu0 %v7593_v33  ;;  %5672 = vmatprep.subr.bf16.mxu1 %v7596_v46 }
 0x10f   : > { %5768 = vmatprep.subr.bf16.mxu0 %v7597_v4  ;;  %5189 = vmatmul.mubr.f32.gmra.mrb[22].mxu1 %v6250_v44 }
 0x110   : > { %5429 = vmatmul.mubr.f32.gmra.mrb[22].mxu0 %v6250_v44  ;;  %5191 = vmatprep.mubr.f32.mxu1 %v6263_v54 }
 0x111   : > { %5431 = vmatprep.mubr.f32.mxu0 %v6263_v54  ;;  %5674 = vmatpush3.bf16.msra.mxu1 %v7596_v46 }
 0x112   : > { %5770 = vmatpush3.bf16.msra.mxu0 %v7597_v4  ;;  %4130 = vperm.xlu1 %6030, %v6031_v29  }
 0x113   : > { %4150 = vperm.xlu0 %6029, %v7572_v8   ;;  %5192 = vmatmul.mubr.f32.gmra.mrb[24].mxu1 %v6272_v0  ;;  %v7122_v8 = vpop.permute.xlu0 %1469 }
 0x114   : > { %5432 = vmatmul.mubr.f32.gmra.mrb[24].mxu0 %v6272_v0  ;;  %5194 = vmatprep.mubr.f32.mxu1 %v6306_v39 }
 0x115   : > { %5434 = vmatprep.mubr.f32.mxu0 %v6306_v39 }
 0x116   : > { %4138 = vperm.xlu1 %6030, %v7569_v30   ;;  %v7112_v30 = vpop.permute.xlu1 %1544 }
 0x117   : > { %4158 = vperm.xlu0 %6029, %v7576_v17   ;;  %5195 = vmatmul.mubr.f32.gmra.mrb[26].mxu1 %v6318_v49 }
 0x118   : > { %5435 = vmatmul.mubr.f32.gmra.mrb[26].mxu0 %v6318_v49  ;;  %5197 = vmatprep.mubr.f32.mxu1 %v6333_v2 }
 0x119   : > { %5437 = vmatprep.mubr.f32.mxu0 %v6333_v2 }
 0x11a   : > { %4146 = vperm.xlu1 %6030, %v7573_v51   ;;  %v1569_v51 = vpop.permute.xlu1 %1568 }
 0x11b   : > { %4166 = vperm.xlu0 %6029, %v7580_v43   ;;  %5198 = vmatmul.mubr.f32.gmra.mrb[28].mxu1 %v6355_v23 }
 0x11c   : > { %5438 = vmatmul.mubr.f32.gmra.mrb[28].mxu0 %v6355_v23  ;;  %5200 = vmatprep.mubr.f32.mxu1 %v6370_v52 }
 0x11d   : > { %5440 = vmatprep.mubr.f32.mxu0 %v6370_v52 }
 0x11e   : > { %4154 = vperm.xlu1 %6030, %v7577_v57  }
 0x11f   : > { %4174 = vperm.xlu0 %6029, %v6759_v22   ;;  %5201 = vmatmul.mubr.f32.gmra.mrb[30].mxu1 %v7584_v38  ;;  %v1475_v22 = vpop.permute.xlu0 %1474 }
 0x120   : > { %5441 = vmatmul.mubr.f32.gmra.mrb[30].mxu0 %v7584_v38  ;;  %5219 = vmatprep.mubr.f32.mxu1 %v7579_v7 }
 0x121   : > { %5459 = vmatprep.mubr.f32.mxu0 %v7579_v7 }
 0x122   : > { %4162 = vperm.xlu1 %6030, %v7581_v3  }
 0x123   : > { %4182 = vperm.xlu0 %6029, %v6795_v53   ;;  %5220 = vmatmul.mubr.f32.vlgmr.msra.gmra.mrb[16].mxu1 %v7582_v19  ;;  %v1573_v53 = vpop.permute.xlu1 %1572 }
 0x124   : > { %5460 = vmatmul.mubr.f32.vlgmr.msra.gmra.mrb[16].mxu0 %v7582_v19  ;;  %5222 = vmatprep.mubr.f32.mxu1 %v6159_v50 }
 0x125   : > { %5462 = vmatprep.mubr.f32.mxu0 %v6159_v50  ;;  %v1490_v50 = vpop.permute.xlu0 %1489 }
 0x126   : > { %4170 = vperm.xlu1 %6030, %v6762_v12  }
 0x127   : > { %5223 = vmatmul.mubr.f32.gmra.mrb[18].mxu1 %v6176_v60 }
 0x128   : > { %5463 = vmatmul.mubr.f32.gmra.mrb[18].mxu0 %v6176_v60  ;;  %5225 = vmatprep.mubr.f32.mxu1 %v6178_v61  ;;  %v1581_v60 = vpop.permute.xlu1 %1580 }
 0x129   : > { %5465 = vmatprep.mubr.f32.mxu0 %v6178_v61  ;;  %v1500_v61 = vpop.permute.xlu0 %1499 }
 0x12a   : > { %4178 = vperm.xlu1 %6030, %v6798_v56  }
 0x12b   : > { %5226 = vmatmul.mubr.f32.gmra.mrb[20].mxu1 %v6180_v62 }
 0x12c   : > { %5466 = vmatmul.mubr.f32.gmra.mrb[20].mxu0 %v6180_v62  ;;  %5228 = vmatprep.mubr.f32.mxu1 %v6236_v36  ;;  %v1589_v62 = vpop.permute.xlu1 %1588 }
 0x12d   : > { %5468 = vmatprep.mubr.f32.mxu0 %v6236_v36  ;;  %v1510_v63 = vpop.permute.xlu0 %1509 }
 0x12f   : > { %5229 = vmatmul.mubr.f32.gmra.mrb[22].mxu1 %v6250_v44 }
 0x130   : > { %5469 = vmatmul.mubr.f32.gmra.mrb[22].mxu0 %v6250_v44  ;;  %5231 = vmatprep.mubr.f32.mxu1 %v6263_v54 }
 0x131   : > { %5471 = vmatprep.mubr.f32.mxu0 %v6263_v54  ;;  %v1520_v35 = vpop.permute.xlu0 %1519 }
 0x133   : > { %5232 = vmatmul.mubr.f32.gmra.mrb[24].mxu1 %v6272_v0 }
 0x134   : > { %5472 = vmatmul.mubr.f32.gmra.mrb[24].mxu0 %v6272_v0  ;;  %5234 = vmatprep.mubr.f32.mxu1 %v6306_v39 }
 0x135   : > { %5474 = vmatprep.mubr.f32.mxu0 %v6306_v39 }
 0x136   : > { %v4861_v36 = vpop.f32.mrb[0].mxu1 }
 0x137   : > { %v4981_v12 = vpop.f32.mrb[0].mxu0  ;;  %v803_v17 = vpop.f32.mrb[1].mxu1  ;;  %5235 = vmatmul.mubr.f32.gmra.mrb[26].mxu1 %v6318_v49 }
 0x138   : > { %v5771_v56 = vadd.f32 %v4981_v12, %v4861_v36  ;;  %v1373_v44 = vpop.f32.mrb[1].mxu0  ;;  %5475 = vmatmul.mubr.f32.gmra.mrb[26].mxu0 %v6318_v49  ;;  %5237 = vmatprep.mubr.f32.mxu1 %v6333_v2 }
 0x139   : > { %v7148_v54 = vadd.f32 %v1373_v44, %v803_v17  ;;  %5477 = vmatprep.mubr.f32.mxu0 %v6333_v2  ;;  %v1597_v2 = vpop.permute.xlu1 %1596 }
 0x13a   : > { %v1548_v0 = vmul.f32 %v5771_v56, %v1475_v22  ;;  %v4864_v57 = vpop.f32.mrb[2].mxu1  ;;  %v1530_v22 = vpop.permute.xlu0 %1529 }
 0x13b   : > { %v4984_v39 = vpop.f32.mrb[2].mxu0  ;;  %v817_v3 = vpop.f32.mrb[3].mxu1  ;;  %5238 = vmatmul.mubr.f32.gmra.mrb[28].mxu1 %v6355_v23 }
 0x13c   : > { %v7152_v7 = vadd.f32 %v1569_v51, %v1548_v0  ;;  %v7154_v43 = vadd.f32 %v4984_v39, %v4864_v57  ;;  %v1385_v19 = vpop.f32.mrb[3].mxu0  ;;  %5478 = vmatmul.mubr.f32.gmra.mrb[28].mxu0 %v6355_v23  ;;  %5240 = vmatprep.mubr.f32.mxu1 %v6370_v52 }
 0x13d   : > { %v5774_v49 = vadd.f32 %v1385_v19, %v817_v3  ;;  %5480 = vmatprep.mubr.f32.mxu0 %v6370_v52  ;;  %v1605_v55 = vpop.permute.xlu1 %1604 }
 0x13e   : > { %v4867_v21 = vpop.f32.mrb[4].mxu1 }
 0x13f   : > { %v4987_v41 = vpop.f32.mrb[4].mxu0  ;;  %v1549_v25 = vmul.f32 %v5774_v49, %v7028_v28  ;;  %v831_v46 = vpop.f32.mrb[5].mxu1  ;;  %5241 = vmatmul.mubr.f32.gmra.mrb[30].mxu1 %v7584_v38 }
 0x140   : > { %v7161_v33 = vadd.f32 %v4987_v41, %v4867_v21  ;;  %v1397_v4 = vpop.f32.mrb[5].mxu0  ;;  %5481 = vmatmul.mubr.f32.gmra.mrb[30].mxu0 %v7584_v38 }
 0x141   : > { %v7165_v23 = vadd.f32 %v1573_v53, %v1549_v25  ;;  %v5776_v37 = vadd.f32 %v1397_v4, %v831_v46  ;;  %v1613_v53 = vpop.permute.xlu1 %1612 }
 0x142   : > { %v4870_v20 = vpop.f32.mrb[6].mxu1 }
 0x143   : > { %v4990_v48 = vpop.f32.mrb[6].mxu0  ;;  %v1551_v52 = vmul.f32 %v5776_v37, %v1490_v50  ;;  %v845_v5 = vpop.f32.mrb[7].mxu1 }
 0x144   : > { %v7167_v47 = vadd.f32 %v4990_v48, %v4870_v20  ;;  %v1409_v16 = vpop.f32.mrb[7].mxu0 }
 0x145   : > { %v7169_v10 = vadd.f32 %v1581_v60, %v1551_v52  ;;  %v5778_v31 = vadd.f32 %v1409_v16, %v845_v5  ;;  %v1621_v21 = vpop.permute.xlu1 %1620 }
 0x146   : > { %v4873_v58 = vpop.f32.mrb[8].mxu1 }
 0x147   : > { %v4993_v6 = vpop.f32.mrb[8].mxu0  ;;  %v1553_v26 = vmul.f32 %v5778_v31, %v1500_v61  ;;  %v859_v38 = vpop.f32.mrb[9].mxu1 }
 0x148   : > { %v7171_v1 = vadd.f32 %v4993_v6, %v4873_v58  ;;  %v1421_v9 = vpop.f32.mrb[9].mxu0 }
 0x149   : > { %v7173_v28 = vadd.f32 %v1589_v62, %v1553_v26  ;;  %v5780_v34 = vadd.f32 %v1421_v9, %v859_v38  ;;  %v2836_v16 = vpop.permute.xlu1 %2835 }
 0x14a   : > { %v4876_v24 = vpop.f32.mrb[10].mxu1 }
 0x14b   : > { %v4996_v42 = vpop.f32.mrb[10].mxu0  ;;  %v1555_v27 = vmul.f32 %v5780_v34, %v1510_v63  ;;  %v873_v15 = vpop.f32.mrb[11].mxu1 }
 0x14c   : > { %v7175_v11 = vadd.f32 %v4996_v42, %v4876_v24  ;;  %v1433_v14 = vpop.f32.mrb[11].mxu0 }
 0x14d   : > { %v7177_v29 = vadd.f32 %v1597_v2, %v1555_v27  ;;  %v5782_v51 = vadd.f32 %v1433_v14, %v873_v15  ;;  %v1540_v2 = vpop.permute.xlu0 %1539 }
 0x14e   : > { %v4879_v50 = vpop.f32.mrb[12].mxu1 }
 0x14f   : > { %v4999_v60 = vpop.f32.mrb[12].mxu0  ;;  %v1557_v61 = vmul.f32 %v5782_v51, %v1520_v35  ;;  %v887_v62 = vpop.f32.mrb[13].mxu1 }
 0x150   : > { %v7179_v36 = vadd.f32 %v4999_v60, %v4879_v50  ;;  %v1445_v12 = vpop.f32.mrb[13].mxu0  ;;  %v2844_v35 = vpop.permute.xlu1 %2843 }
 0x151   : > { %v7181_v56 = vadd.f32 %v1605_v55, %v1557_v61  ;;  %v5784_v17 = vadd.f32 %v1445_v12, %v887_v62  ;;  %v1565_v46 = vpop.permute.xlu0 %1564 }
 0x152   : > { %v4882_v44 = vpop.f32.mrb[14].mxu1 }
 0x153   : > { %v5002_v0 = vpop.f32.mrb[14].mxu0  ;;  %v1559_v57 = vmul.f32 %v5784_v17, %v1530_v22  ;;  %v901_v3 = vpop.f32.mrb[15].mxu1  ;;  %v1547_v17 = vmul.f32 %v7148_v54, %v7122_v8 }
 0x154   : > { %v7183_v39 = vadd.f32 %v5002_v0, %v4882_v44  ;;  %v1457_v19 = vpop.f32.mrb[15].mxu0  ;;  %v2848_v58 = vpop.permute.xlu1 %2847 }
 0x155   : > { %v7185_v49 = vadd.f32 %v1613_v53, %v1559_v57  ;;  %v5786_v63 = vadd.f32 %v1457_v19, %v901_v3  ;;  %v1577_v4 = vpop.permute.xlu0 %1576  ;;  %v1550_v19 = vmul.f32 %v7154_v43, %v7038_v32 }
 0x157   : > { %v1561_v41 = vmul.f32 %v5786_v63, %v1540_v2  ;;  %v1630_v43 = vadd.f32 %v1577_v4, %v1550_v19 }
 0x158   : > { %v2856_v26 = vpop.permute.xlu1 %2855 }
 0x159   : > { %v7187_v25 = vadd.f32 %v1621_v21, %v1561_v41  ;;  %v7189_v37 = vpop.permute.xlu0 %1584  ;;  %v1627_v41 = vadd.f32 %v1565_v46, %v1547_v17  ;;  %v1552_v46 = vmul.f32 %v7161_v33, %v7050_v45 }
 0x15b   : > { %7631 = vst [vmem:[#allocation54_spill] sm:$0xff] %v7187_v25 }
 0x15c   : > { %v7203_v9 = vpop.permute.xlu1 %2863 }
 0x15d   : > { %v7191_v20 = vpop.permute.xlu0 %1592 }
 0x160   : > { %v7207_v24 = vpop.permute.xlu1 %2871 }
 0x161   : > { %v7193_v48 = vpop.permute.xlu0 %1600 }
 0x165   : > { %v7195_v52 = vpop.permute.xlu0 %1608 }
 0x169   : > { %v7197_v5 = vpop.permute.xlu0 %1616 }
 0x16d   : > { %v7199_v31 = vpop.permute.xlu0 %1624 }
 0x16e   : > { %7632 = vst [vmem:[#allocation16_spill] sm:$0xff] %v7199_v31 }
 0x171   : > { %v2840_v55 = vpop.permute.xlu0 %2839 }
 0x174   : > { %v7211_v27 = vpop.permute.xlu1 %2879 }
 0x175   : > { %v2852_v6 = vpop.permute.xlu0 %2851 }
 0x178   : > { %v7215_v14 = vpop.permute.xlu1 %2887 }
 0x179   : > { %v7201_v38 = vpop.permute.xlu0 %2859 }
 0x17c   : > { %v7219_v22 = vpop.permute.xlu1 %2895 }
 0x17d   : > { %v7205_v34 = vpop.permute.xlu0 %2867  ;;  %7634 = vst [vmem:[#allocation53_spill] sm:$0xff] %v7219_v22 }
 0x181   : > { %v7209_v42 = vpop.permute.xlu0 %2875  ;;  %v4127_v53 = vpop.permute.xlu1 %4126 }
 0x185   : > { %v7213_v15 = vpop.permute.xlu0 %2883 }
 0x189   : > { %v7217_v51 = vpop.permute.xlu0 %2891 }
 0x18a   : > { %7633 = vst [vmem:[#allocation55_spill] sm:$0xff] %v7217_v51 }
 0x18d   : > { %v4123_v50 = vpop.permute.xlu0 %4122 }
 0x191   : > { %v4131_v60 = vpop.permute.xlu1 %4130  ;;  %v4135_v61 = vpop.permute.xlu0 %4134 }
 0x195   : > { %v4139_v62 = vpop.permute.xlu1 %4138  ;;  %v4143_v12 = vpop.permute.xlu0 %4142 }
 0x199   : > { %v7223_v44 = vpop.permute.xlu1 %4146  ;;  %v7225_v0 = vpop.permute.xlu0 %4150 }
 0x1f6   : > { %v5221_v57 = vpop.f32.mrb[16].mxu1 }
 0x1f7   : > { %v5461_v3 = vpop.f32.mrb[16].mxu0  ;;  %v2899_v63 = vmul.f32 %v5221_v57, %v2840_v55  ;;  %v2740_v2 = vpop.f32.mrb[17].mxu1 }
 0x1f8   : > { %v4027_v21 = vpop.f32.mrb[17].mxu0  ;;  %v2898_v25 = vmul.f32 %v2836_v16, %v2740_v2  ;;  %v4186_v22 = vmul.f32 %v5461_v3, %v4127_v53  ;;  %v4155_v3 = vpop.permute.xlu1 %4154 }
 0x1f9   : > { %v2915_v51 = vadd.f32 %v2899_v63, %v7152_v7  ;;  %v4185_v54 = vmul.f32 %v4123_v50, %v4027_v21  ;;  %v4159_v63 = vpop.permute.xlu0 %4158 }
 0x1fa   : > { %v2914_v8 = vadd.f32 %v2898_v25, %v1627_v41  ;;  %v5224_v31 = vpop.f32.mrb[18].mxu1 }
 0x1fb   : > { %v5464_v32 = vpop.f32.mrb[18].mxu0  ;;  %v4202_v16 = vadd.f32 %v4186_v22, %v2915_v51  ;;  %v2901_v55 = vmul.f32 %v5224_v31, %v2848_v58  ;;  %v2752_v7 = vpop.f32.mrb[19].mxu1  ;;  %v1632_v31 = vadd.f32 %v7189_v37, %v1552_v46 }
 0x1fc   : > { %v4039_v53 = vpop.f32.mrb[19].mxu0  ;;  %v4201_v17 = vadd.f32 %v4185_v54, %v2914_v8  ;;  %v2900_v57 = vmul.f32 %v2844_v35, %v2752_v7  ;;  %v4188_v50 = vmul.f32 %v5464_v32, %v4135_v61  ;;  %v1554_v35 = vmul.f32 %v7167_v47, %v7062_v59 }
 0x1fd   : > { %4219 = vst.msk [vmem:[%s7234_s21 + $0x8] sm:$0xff] %vm4217_vm1, %v4202_v16  ;;  %v2917_v25 = vadd.f32 %v2901_v55, %v1630_v43  ;;  %v4187_v19 = vmul.f32 %v4131_v60, %v4039_v53  ;;  %v1556_v47 = vmul.f32 %v7171_v1, %v7076_v13  ;;  %v4163_v16 = vpop.permute.xlu1 %4162  ;;  %v4167_v55 = vpop.permute.xlu0 %4166 }
 0x1fe   : > { %4218 = vst.msk [vmem:[%s7234_s21] sm:$0xff] %vm4217_vm1, %v4201_v17  ;;  %v2916_v4 = vadd.f32 %v2900_v57, %v7165_v23  ;;  %v5227_v45 = vpop.f32.mrb[20].mxu1  ;;  %v1634_v59 = vadd.f32 %v7191_v20, %v1554_v35 }
 0x1ff   : > { %v5467_v33 = vpop.f32.mrb[20].mxu0  ;;  %v4204_v58 = vadd.f32 %v4188_v50, %v2917_v25  ;;  %v2903_v51 = vmul.f32 %v5227_v45, %v2856_v26  ;;  %v2764_v22 = vpop.f32.mrb[21].mxu1  ;;  %v1636_v7 = vadd.f32 %v7193_v48, %v1556_v47  ;;  %v7636_v47 = vld [vmem:[#allocation53_spill] sm:$0xff] }
 0x200   : > { %v4051_v2 = vpop.f32.mrb[21].mxu0  ;;  %v4203_v21 = vadd.f32 %v4187_v19, %v2916_v4  ;;  %v2902_v41 = vmul.f32 %v2852_v6, %v2764_v22  ;;  %v4190_v8 = vmul.f32 %v5467_v33, %v4143_v12  ;;  %v1560_v19 = vmul.f32 %v7179_v36, %v7102_v40 }
 0x201   : > { %4221 = vst.msk [vmem:[%s7234_s21 + $0x18] sm:$0xff] %vm4217_vm1, %v4204_v58  ;;  %v2919_v61 = vadd.f32 %v2903_v51, %v1632_v31  ;;  %v4189_v60 = vmul.f32 %v4139_v62, %v4051_v2  ;;  %v4171_v58 = vpop.permute.xlu1 %4170  ;;  %v4175_v51 = vpop.permute.xlu0 %4174 }
 0x202   : > { %4220 = vst.msk [vmem:[%s7234_s21 + $0x10] sm:$0xff] %vm4217_vm1, %v4203_v21  ;;  %v2918_v23 = vadd.f32 %v2902_v41, %v7169_v10  ;;  %v5230_v37 = vpop.f32.mrb[22].mxu1  ;;  %v1640_v22 = vadd.f32 %v7197_v5, %v1560_v19 }
 0x203   : > { %v5470_v54 = vpop.f32.mrb[22].mxu0  ;;  %v4206_v26 = vadd.f32 %v4190_v8, %v2919_v61  ;;  %v2905_v6 = vmul.f32 %v5230_v37, %v7203_v9  ;;  %v2776_v32 = vpop.f32.mrb[23].mxu1 }
 0x204   : > { %v4063_v43 = vpop.f32.mrb[23].mxu0  ;;  %v4205_v12 = vadd.f32 %v4189_v60, %v2918_v23  ;;  %v2904_v46 = vmul.f32 %v7201_v38, %v2776_v32  ;;  %v4192_v62 = vmul.f32 %v5470_v54, %v7225_v0  ;;  %v1558_v38 = vmul.f32 %v7175_v11, %v7090_v18  ;;  %v7635_v54 = vld [vmem:[#allocation16_spill] sm:$0xff] }
 0x205   : > { %4223 = vst.msk [vmem:[%s7234_s21 + $0x28] sm:$0xff] %vm4217_vm1, %v4206_v26  ;;  %v2921_v10 = vadd.f32 %v2905_v6, %v1634_v59  ;;  %v4191_v1 = vmul.f32 %v7223_v44, %v4063_v43  ;;  %v4183_v32 = vpop.permute.xlu0 %4182 }
 0x206   : > { %4222 = vst.msk [vmem:[%s7234_s21 + $0x20] sm:$0xff] %vm4217_vm1, %v4205_v12  ;;  %v2920_v13 = vadd.f32 %v2904_v46, %v7173_v28  ;;  %v5233_v20 = vpop.f32.mrb[24].mxu1  ;;  %v7637_v12 = vld [vmem:[#allocation55_spill] sm:$0xff] }
 0x207   : > { %v5473_v9 = vpop.f32.mrb[24].mxu0  ;;  %v4208_v53 = vadd.f32 %v4192_v62, %v2921_v10  ;;  %v2907_v17 = vmul.f32 %v5233_v20, %v7207_v24  ;;  %v2788_v57 = vpop.f32.mrb[25].mxu1  ;;  %v1638_v24 = vadd.f32 %v7195_v52, %v1558_v38  ;;  %v7638_v10 = vld [vmem:[#allocation54_spill] sm:$0xff] }
 0x208   : > { %v4075_v25 = vpop.f32.mrb[25].mxu0  ;;  %v4207_v0 = vadd.f32 %v4191_v1, %v2920_v13  ;;  %v2906_v50 = vmul.f32 %v7205_v34, %v2788_v57  ;;  %v4194_v4 = vmul.f32 %v5473_v9, %v4159_v63 }
 0x209   : > { %4225 = vst.msk [vmem:[%s7234_s21 + $0x38] sm:$0xff] %vm4217_vm1, %v4208_v53  ;;  %v2923_v28 = vadd.f32 %v2907_v17, %v1636_v7  ;;  %v4193_v44 = vmul.f32 %v4155_v3, %v4075_v25 }
 0x20a   : > { %4224 = vst.msk [vmem:[%s7234_s21 + $0x30] sm:$0xff] %vm4217_vm1, %v4207_v0  ;;  %v2922_v48 = vadd.f32 %v2906_v50, %v7177_v29  ;;  %v5236_v18 = vpop.f32.mrb[26].mxu1 }
 0x20b   : > { %v5476_v11 = vpop.f32.mrb[26].mxu0  ;;  %v4210_v45 = vadd.f32 %v4194_v4, %v2923_v28  ;;  %v2909_v34 = vmul.f32 %v5236_v18, %v7211_v27  ;;  %v2800_v33 = vpop.f32.mrb[27].mxu1 }
 0x20c   : > { %v4087_v31 = vpop.f32.mrb[27].mxu0  ;;  %v4209_v63 = vadd.f32 %v4193_v44, %v2922_v48  ;;  %v2908_v35 = vmul.f32 %v7209_v42, %v2800_v33  ;;  %v4196_v3 = vmul.f32 %v5476_v11, %v4167_v55  ;;  %v1562_v42 = vmul.f32 %v7183_v39, %v7112_v30 }
 0x20d   : > { %4227 = vst.msk [vmem:[%s7234_s21 + $0x48] sm:$0xff] %vm4217_vm1, %v4210_v45  ;;  %v2925_v29 = vadd.f32 %v2909_v34, %v1638_v24  ;;  %v4195_v36 = vmul.f32 %v4163_v16, %v4087_v31  ;;  %v4179_v16 = vpop.permute.xlu1 %4178 }
 0x20e   : > { %4226 = vst.msk [vmem:[%s7234_s21 + $0x40] sm:$0xff] %vm4217_vm1, %v4209_v63  ;;  %v2924_v40 = vadd.f32 %v2908_v35, %v7181_v56  ;;  %v5239_v52 = vpop.f32.mrb[28].mxu1 }
 0x20f   : > { %v5479_v27 = vpop.f32.mrb[28].mxu0  ;;  %v4212_v2 = vadd.f32 %v4196_v3, %v2925_v29  ;;  %v2911_v21 = vmul.f32 %v5239_v52, %v7215_v14  ;;  %v2812_v41 = vpop.f32.mrb[29].mxu1  ;;  %v1642_v14 = vadd.f32 %v7635_v54, %v1562_v42 }
 0x210   : > { %v4099_v61 = vpop.f32.mrb[29].mxu0  ;;  %v4211_v8 = vadd.f32 %v4195_v36, %v2924_v40  ;;  %v2910_v23 = vmul.f32 %v7213_v15, %v2812_v41  ;;  %v4198_v56 = vmul.f32 %v5479_v27, %v4175_v51 }
 0x211   : > { %4229 = vst.msk [vmem:[%s7234_s21 + $0x58] sm:$0xff] %vm4217_vm1, %v4212_v2  ;;  %v2927_v60 = vadd.f32 %v2911_v21, %v1640_v22  ;;  %v4197_v37 = vmul.f32 %v4171_v58, %v4099_v61 }
 0x212   : > { %4228 = vst.msk [vmem:[%s7234_s21 + $0x50] sm:$0xff] %vm4217_vm1, %v4211_v8  ;;  %v2926_v5 = vadd.f32 %v2910_v23, %v7185_v49  ;;  %v5242_v30 = vpop.f32.mrb[30].mxu1 }
 0x213   : > { %v5482_v39 = vpop.f32.mrb[30].mxu0  ;;  %v4214_v59 = vadd.f32 %v4198_v56, %v2927_v60  ;;  %v2913_v26 = vmul.f32 %v5242_v30, %v7636_v47  ;;  %v2824_v15 = vpop.f32.mrb[31].mxu1 }
 0x214   : > { %v4111_v6 = vpop.f32.mrb[31].mxu0  ;;  %v4213_v43 = vadd.f32 %v4197_v37, %v2926_v5  ;;  %v2912_v46 = vmul.f32 %v7637_v12, %v2824_v15  ;;  %v4200_v55 = vmul.f32 %v5482_v39, %v4183_v32 }
 0x215   : > { %4231 = vst.msk [vmem:[%s7234_s21 + $0x68] sm:$0xff] %vm4217_vm1, %v4214_v59  ;;  %v2929_v49 = vadd.f32 %v2913_v26, %v1642_v14  ;;  %v4199_v13 = vmul.f32 %v4179_v16, %v4111_v6 }
 0x216   : > { %4230 = vst.msk [vmem:[%s7234_s21 + $0x60] sm:$0xff] %vm4217_vm1, %v4213_v43  ;;  %v2928_v62 = vadd.f32 %v2912_v46, %v7638_v10 }
 0x217   : > { %v4216_v1 = vadd.f32 %v4200_v55, %v2929_v49 }
 0x218   : > { %v4215_v20 = vadd.f32 %v4199_v13, %v2928_v62 }
 0x219   : > { %4233 = vst.msk [vmem:[%s7234_s21 + $0x78] sm:$0xff] %vm4217_vm1, %v4216_v1 }
 0x21a   : > { %4232 = vst.msk [vmem:[%s7234_s21 + $0x70] sm:$0xff] %vm4217_vm1, %v4215_v20 }
 0x21b PF: > { %s13_s12 = sadd.s32 1, %s6038_s12  }
 0x21c   : > { %p10_p4 = scmp.ge.s32.totalorder %s13_s12, 4  }
 0x21e   :  { %12 = sbr.rel (!%p10_p4) target bundleno = 1 (0x1), region = 67 }

</bundles_post_ra>
